<compile_context>
chip_gen: v7x
topology: tpu7x:2x2x1
jax: 0.10.0
libtpu: 0.0.40
codegen_flags: <defaults>
</compile_context>

<pallas_src>
import jax
import jax.numpy as jnp
from jax import lax
from jax.experimental import pallas as pl
from jax.experimental.pallas import tpu as pltpu


# ---------------------------------------------------------------------------
# Preferred path: depth-plane carry with manual double-buffered DMA (P4).
# ---------------------------------------------------------------------------
def _conv_plane_carry_kernel(col_hbm, w_ref, b_ref, o_ref, colbuf, sem):
    """One (n, d) grid step = one full output depth plane.

    col_hbm: (N, 9*Cin, D+2, HW) in HBM (memory_space=ANY): 9 in-plane taps.
    w_ref:   (3, Cout, 9*Cin)    per-kd packed weights (resident).
    b_ref:   (Cout, 1)           bias (resident).
    o_ref:   (1, Cout, HW)       output plane tile.
    colbuf:  (4, 9*Cin, HW) VMEM rotating window holding padded input planes
                              d, d+1, d+2 (+1 slot for the prefetch of d+3).
    sem:     DMA semaphores, one per slot.
    """
    n = pl.program_id(0)
    d = pl.program_id(1)
    n_planes = pl.num_programs(1) + 2          # D + 2 padded depth planes

    def plane_copy(p, slot):
        return pltpu.make_async_copy(col_hbm.at[n, :, p, :],
                                     colbuf.at[slot], sem.at[slot])

    # First output plane of this batch element: fill the 3-plane window.
    @pl.when(d == 0)
    def _start_window():
        plane_copy(0, 0).start()
        plane_copy(1, 1).start()
        plane_copy(2, 2).start()

    # Prefetch the plane needed by the *next* output plane; its slot
    # ((d+3) % 4) holds plane d-1, which is no longer needed at step d.
    nxt = d + 3

    @pl.when(nxt < n_planes)
    def _prefetch_next():
        plane_copy(nxt, nxt % 4).start()

    @pl.when(d == 0)
    def _wait_window_head():
        plane_copy(0, 0).wait()
        plane_copy(1, 1).wait()

    plane_copy(d + 2, (d + 2) % 4).wait()      # newest plane of the window

    acc = jnp.dot(w_ref[0], colbuf[d % 4],
                  preferred_element_type=jnp.float32)
    acc = acc + jnp.dot(w_ref[1], colbuf[(d + 1) % 4],
                        preferred_element_type=jnp.float32)
    acc = acc + jnp.dot(w_ref[2], colbuf[(d + 2) % 4],
                        preferred_element_type=jnp.float32)
    y = acc + b_ref[...]                       # bias broadcast over lanes
    o_ref[0] = jnp.maximum(y, 0.0).astype(o_ref.dtype)


def _conv_plane_carry(col9, w9, b2, *, N, Cin, Cout, D, HW, out_dtype):
    return pl.pallas_call(
        _conv_plane_carry_kernel,
        out_shape=jax.ShapeDtypeStruct((N, Cout, D * HW), out_dtype),
        grid=(N, D),
        in_specs=[
            pl.BlockSpec(memory_space=pl.ANY),                         # col9 in HBM
            pl.BlockSpec((3, Cout, Cin * 9), lambda n, d: (0, 0, 0)),  # weights resident
            pl.BlockSpec((Cout, 1), lambda n, d: (0, 0)),              # bias resident
        ],
        out_specs=pl.BlockSpec((1, Cout, HW), lambda n, d: (n, 0, d)),
        scratch_shapes=[
            pltpu.VMEM((4, Cin * 9, HW), col9.dtype),
            pltpu.SemaphoreType.DMA((4,)),
        ],
        compiler_params=pltpu.CompilerParams(
            dimension_semantics=("parallel", "arbitrary"),
            vmem_limit_bytes=32 * 1024 * 1024,
        ),
    )(col9, w9, b2)


# ---------------------------------------------------------------------------
# Fallback path: kd-grid BlockSpec pipeline with R-tiling (previous version).
# ---------------------------------------------------------------------------
def _conv_kd_grid_kernel(col_ref, w_ref, b_ref, o_ref, acc_ref):
    """One (n, r, kd) grid step of the 3x3x3 conv (accumulate over kd)."""
    kd = pl.program_id(2)

    @pl.when(kd == 0)
    def _init():
        acc_ref[...] = jnp.zeros_like(acc_ref)

    acc_ref[...] += jnp.dot(w_ref[kd], col_ref[0],
                            preferred_element_type=jnp.float32)

    @pl.when(kd == pl.num_programs(2) - 1)
    def _finalize():
        y = acc_ref[...] + b_ref[...]
        o_ref[0] = jnp.maximum(y, 0.0).astype(o_ref.dtype)


def _pick_tile_r(hw, cin, cout, budget_bytes=12 * 1024 * 1024):
    """TR must divide H*W (whole-block kd plane shift) and be a multiple of
    128 (lane-dense); shrink until tiles fit a conservative v7x VMEM budget."""
    def tile_bytes(tr):
        col = 9 * cin * tr * 4 * 2      # double-buffered input tile
        out = cout * tr * 4 * 2         # double-buffered output tile
        acc = cout * tr * 4             # f32 accumulator scratch
        wgt = 3 * cout * 9 * cin * 4 * 2
        return col + out + acc + wgt

    tr = hw
    while tr > 128 and tile_bytes(tr) > budget_bytes:
        half = tr // 2
        if half % 128 == 0 and hw % half == 0:
            tr = half
        else:
            break
    return tr


def _conv_kd_grid(col9_flat, w9, b2, *, N, Cin, Cout, D, HW, out_dtype):
    R = D * HW
    TR = _pick_tile_r(HW, Cin, Cout)
    n_r = R // TR
    shift = HW // TR                     # kd plane offset, in blocks
    return pl.pallas_call(
        _conv_kd_grid_kernel,
        out_shape=jax.ShapeDtypeStruct((N, Cout, R), out_dtype),
        grid=(N, n_r, 3),
        in_specs=[
            pl.BlockSpec((1, Cin * 9, TR),
                         lambda n, r, kd: (n, 0, r + kd * shift)),
            pl.BlockSpec((3, Cout, Cin * 9), lambda n, r, kd: (0, 0, 0)),
            pl.BlockSpec((Cout, 1), lambda n, r, kd: (0, 0)),
        ],
        out_specs=pl.BlockSpec((1, Cout, TR), lambda n, r, kd: (n, 0, r)),
        scratch_shapes=[pltpu.VMEM((Cout, TR), jnp.float32)],
        compiler_params=pltpu.CompilerParams(
            dimension_semantics=("parallel", "parallel", "arbitrary"),
            vmem_limit_bytes=32 * 1024 * 1024,
        ),
    )(col9_flat, w9, b2)


# ---------------------------------------------------------------------------
# Public wrapper.
# ---------------------------------------------------------------------------
def us_block_nounpool(x, weight, bias):
    """Conv3d(3x3x3, stride 1, pad 1) + bias + ReLU.  x: (N, Cin, D, H, W)."""
    N, Cin, D, H, W = x.shape
    Cout = weight.shape[0]
    HW = H * W
    assert HW % 128 == 0, "H*W must be a multiple of 128 for lane-dense tiling"
    # TODO(synk): add a lane-padded fallback for H*W not divisible by 128.

    # ---- glue (channels-first, no transposes) -------------------------------
    # Materialize only the 9 in-plane (kh, kw) taps; the 3 depth taps are
    # handled inside the kernel (plane carry / kd grid-axis).
    xp = jnp.pad(x, ((0, 0), (0, 0), (1, 1), (1, 1), (1, 1)))
    slabs = [xp[:, :, :, kh:kh + H, kw:kw + W]
             for kh in range(3) for kw in range(3)]           # 9 x (N,Cin,D+2,H,W)
    col9 = jnp.stack(slabs, axis=2)                           # (N,Cin,9,D+2,H,W)
    col9 = col9.reshape(N, Cin * 9, D + 2, HW)                # plane-indexable

    # weights: (Cout,Cin,3,3,3) -> (kd, Cout, Cin*9), matching col9's
    # (cin, kh, kw) row ordering.
    w9 = jnp.transpose(weight, (2, 0, 1, 3, 4)).reshape(3, Cout, Cin * 9)
    b2 = bias.reshape(Cout, 1)

    itemsize = jnp.dtype(x.dtype).itemsize
    carry_vmem = (4 * Cin * 9 * HW * itemsize      # rotating plane window
                  + 2 * Cout * HW * itemsize       # double-buffered out tile
                  + 2 * 3 * Cout * Cin * 9 * 4     # resident weights
                  + 2 * Cout * 4)                  # resident bias
    if carry_vmem <= 20 * 1024 * 1024:
        out = _conv_plane_carry(col9, w9, b2, N=N, Cin=Cin, Cout=Cout,
                                D=D, HW=HW, out_dtype=x.dtype)
    else:
        out = _conv_kd_grid(col9.reshape(N, Cin * 9, (D + 2) * HW), w9, b2,
                            N=N, Cin=Cin, Cout=Cout, D=D, HW=HW,
                            out_dtype=x.dtype)

    return out.reshape(N, Cout, D, H, W)                      # already NCDHW


if __name__ == "__main__":
    key = jax.random.PRNGKey(0)
    k1, k2, k3 = jax.random.split(key, 3)

    N, Cin, Cout, D, H, W = 2, 8, 16, 8, 16, 16
    x = jax.random.normal(k1, (N, Cin, D, H, W), jnp.float32)

    # Deterministic params matching nn.Conv3d(Cin, Cout, 3) init ranges.
    fan_in = Cin * 3 * 3 * 3
    bound = 1.0 / (fan_in ** 0.5)
    weight = jax.random.uniform(k2, (Cout, Cin, 3, 3, 3), jnp.float32, -bound, bound)
    bias = jax.random.uniform(k3, (Cout,), jnp.float32, -bound, bound)

    out = jax.jit(us_block_nounpool)(x, weight, bias)
    out = jax.block_until_ready(out)

    # Pure-JAX reference for a correctness sanity check.
    ref = lax.conv_general_dilated(
        x, weight, window_strides=(1, 1, 1), padding=[(1, 1)] * 3,
        dimension_numbers=("NCDHW", "OIDHW", "NCDHW"),
        precision=lax.Precision.HIGHEST)
    ref = jnp.maximum(ref + bias[None, :, None, None, None], 0.0)

    assert out.shape == (N, Cout, D, H, W)
    assert jnp.allclose(out, ref, atol=1e-3, rtol=1e-3), \
        float(jnp.max(jnp.abs(out - ref)))
    print("KERNEL_OK")
</pallas_src>

<mosaic_0001>
module attributes {stable_mosaic.version = 11 : i64} {
  func.func @_conv_plane_carry_kernel(%arg0: i32, %arg1: i32, %arg2: memref<2x72x10x256xf32, #tpu.memory_space<any>>, %arg3: memref<3x16x72xf32, #tpu.memory_space<vmem>>, %arg4: memref<16x1xf32, #tpu.memory_space<vmem>>, %arg5: memref<1x16x256xf32, #tpu.memory_space<vmem>>, %arg6: memref<4x72x256xf32, #tpu.memory_space<vmem>>, %arg7: memref<4x!tpu.dma_semaphore, #tpu.memory_space<semaphore_mem>>) attributes {dimension_semantics = [#tpu.dimension_semantics<parallel>, #tpu.dimension_semantics<arbitrary>], iteration_bounds = array<i64: 2, 8>, scalar_prefetch = 0 : i64, scratch_operands = 2 : i64, tpu.core_type = #tpu.core_type<tc>, window_params = [{}, {pipeline_mode = #tpu.pipeline_mode<synchronous>, transform_indices = @transform_1, window_bounds = array<i64: 3, 16, 72>}, {pipeline_mode = #tpu.pipeline_mode<synchronous>, transform_indices = @transform_2, window_bounds = array<i64: 16, 1>}, {transform_indices = @transform_3, window_bounds = array<i64: 1, 16, 256>}]} {
    %c0_i32 = arith.constant 0 : i32
    %0 = arith.cmpi eq, %arg1, %c0_i32 : i32
    %1 = arith.extui %0 : i1 to i32
    %c0_i32_0 = arith.constant 0 : i32
    %2 = arith.cmpi ne, %1, %c0_i32_0 : i32
    scf.if %2 {
      %c0_i32_53 = arith.constant 0 : i32
      %c0_i32_54 = arith.constant 0 : i32
      %c0_i32_55 = arith.constant 0 : i32
      %c0_i32_56 = arith.constant 0 : i32
      %c0_i32_57 = arith.constant 0 : i32
      %88 = tpu.memref_slice %arg2[%arg0, %c0_i32_56, %c0_i32_53, %c0_i32_57] : memref<2x72x10x256xf32, #tpu.memory_space<any>> -> memref<1x72x1x256xf32, #tpu.memory_space<any>>
      %89 = tpu.memref_squeeze %88 : memref<1x72x1x256xf32, #tpu.memory_space<any>> -> memref<72x256xf32, #tpu.memory_space<any>>
      %c0_i32_58 = arith.constant 0 : i32
      %c0_i32_59 = arith.constant 0 : i32
      %90 = tpu.memref_slice %arg6[%c0_i32_54, %c0_i32_58, %c0_i32_59] : memref<4x72x256xf32, #tpu.memory_space<vmem>> -> memref<1x72x256xf32, #tpu.memory_space<vmem>>
      %91 = tpu.memref_squeeze %90 : memref<1x72x256xf32, #tpu.memory_space<vmem>> -> memref<72x256xf32, #tpu.memory_space<vmem>>
      %92 = tpu.memref_slice %arg7[%c0_i32_55] : memref<4x!tpu.dma_semaphore, #tpu.memory_space<semaphore_mem>> -> memref<1x!tpu.dma_semaphore, #tpu.memory_space<semaphore_mem>>
      %93 = tpu.memref_squeeze %92 : memref<1x!tpu.dma_semaphore, #tpu.memory_space<semaphore_mem>> -> memref<!tpu.dma_semaphore, #tpu.memory_space<semaphore_mem>>
      tpu.enqueue_dma source(%89 : memref<72x256xf32, #tpu.memory_space<any>>) target(%91 : memref<72x256xf32, #tpu.memory_space<vmem>>) target_semaphore(%93 : memref<!tpu.dma_semaphore, #tpu.memory_space<semaphore_mem>>)
      %c1_i32_60 = arith.constant 1 : i32
      %c1_i32_61 = arith.constant 1 : i32
      %c1_i32_62 = arith.constant 1 : i32
      %c0_i32_63 = arith.constant 0 : i32
      %c0_i32_64 = arith.constant 0 : i32
      %94 = tpu.memref_slice %arg2[%arg0, %c0_i32_63, %c1_i32_60, %c0_i32_64] : memref<2x72x10x256xf32, #tpu.memory_space<any>> -> memref<1x72x1x256xf32, #tpu.memory_space<any>>
      %95 = tpu.memref_squeeze %94 : memref<1x72x1x256xf32, #tpu.memory_space<any>> -> memref<72x256xf32, #tpu.memory_space<any>>
      %c0_i32_65 = arith.constant 0 : i32
      %c0_i32_66 = arith.constant 0 : i32
      %96 = tpu.memref_slice %arg6[%c1_i32_61, %c0_i32_65, %c0_i32_66] : memref<4x72x256xf32, #tpu.memory_space<vmem>> -> memref<1x72x256xf32, #tpu.memory_space<vmem>>
      %97 = tpu.memref_squeeze %96 : memref<1x72x256xf32, #tpu.memory_space<vmem>> -> memref<72x256xf32, #tpu.memory_space<vmem>>
      %98 = tpu.memref_slice %arg7[%c1_i32_62] : memref<4x!tpu.dma_semaphore, #tpu.memory_space<semaphore_mem>> -> memref<1x!tpu.dma_semaphore, #tpu.memory_space<semaphore_mem>>
      %99 = tpu.memref_squeeze %98 : memref<1x!tpu.dma_semaphore, #tpu.memory_space<semaphore_mem>> -> memref<!tpu.dma_semaphore, #tpu.memory_space<semaphore_mem>>
      tpu.enqueue_dma source(%95 : memref<72x256xf32, #tpu.memory_space<any>>) target(%97 : memref<72x256xf32, #tpu.memory_space<vmem>>) target_semaphore(%99 : memref<!tpu.dma_semaphore, #tpu.memory_space<semaphore_mem>>)
      %c2_i32_67 = arith.constant 2 : i32
      %c2_i32_68 = arith.constant 2 : i32
      %c2_i32_69 = arith.constant 2 : i32
      %c0_i32_70 = arith.constant 0 : i32
      %c0_i32_71 = arith.constant 0 : i32
      %100 = tpu.memref_slice %arg2[%arg0, %c0_i32_70, %c2_i32_67, %c0_i32_71] : memref<2x72x10x256xf32, #tpu.memory_space<any>> -> memref<1x72x1x256xf32, #tpu.memory_space<any>>
      %101 = tpu.memref_squeeze %100 : memref<1x72x1x256xf32, #tpu.memory_space<any>> -> memref<72x256xf32, #tpu.memory_space<any>>
      %c0_i32_72 = arith.constant 0 : i32
      %c0_i32_73 = arith.constant 0 : i32
      %102 = tpu.memref_slice %arg6[%c2_i32_68, %c0_i32_72, %c0_i32_73] : memref<4x72x256xf32, #tpu.memory_space<vmem>> -> memref<1x72x256xf32, #tpu.memory_space<vmem>>
      %103 = tpu.memref_squeeze %102 : memref<1x72x256xf32, #tpu.memory_space<vmem>> -> memref<72x256xf32, #tpu.memory_space<vmem>>
      %104 = tpu.memref_slice %arg7[%c2_i32_69] : memref<4x!tpu.dma_semaphore, #tpu.memory_space<semaphore_mem>> -> memref<1x!tpu.dma_semaphore, #tpu.memory_space<semaphore_mem>>
      %105 = tpu.memref_squeeze %104 : memref<1x!tpu.dma_semaphore, #tpu.memory_space<semaphore_mem>> -> memref<!tpu.dma_semaphore, #tpu.memory_space<semaphore_mem>>
      tpu.enqueue_dma source(%101 : memref<72x256xf32, #tpu.memory_space<any>>) target(%103 : memref<72x256xf32, #tpu.memory_space<vmem>>) target_semaphore(%105 : memref<!tpu.dma_semaphore, #tpu.memory_space<semaphore_mem>>)
    } else {
    }
    %c3_i32 = arith.constant 3 : i32
    %3 = arith.addi %arg1, %c3_i32 : i32
    %c10_i32 = arith.constant 10 : i32
    %4 = arith.cmpi slt, %3, %c10_i32 : i32
    %5 = arith.extui %4 : i1 to i32
    %c0_i32_1 = arith.constant 0 : i32
    %6 = arith.cmpi ne, %5, %c0_i32_1 : i32
    scf.if %6 {
      %c4_i32_53 = arith.constant 4 : i32
      %c0_i32_54 = arith.constant 0 : i32
      %88 = arith.cmpi eq, %c4_i32_53, %c0_i32_54 : i32
      %c1_i32_55 = arith.constant 1 : i32
      %89 = arith.select %88, %c1_i32_55, %c4_i32_53 : i32
      %90 = arith.remsi %3, %89 : i32
      %c0_i32_56 = arith.constant 0 : i32
      %91 = arith.cmpi ne, %90, %c0_i32_56 : i32
      %c0_i32_57 = arith.constant 0 : i32
      %92 = arith.cmpi slt, %90, %c0_i32_57 : i32
      %c0_i32_58 = arith.constant 0 : i32
      %93 = arith.cmpi slt, %89, %c0_i32_58 : i32
      %94 = arith.xori %92, %93 : i1
      %95 = arith.andi %94, %91 : i1
      %96 = arith.addi %90, %89 : i32
      %97 = arith.select %95, %96, %90 : i32
      %c0_i32_59 = arith.constant 0 : i32
      %c0_i32_60 = arith.constant 0 : i32
      %98 = tpu.memref_slice %arg2[%arg0, %c0_i32_59, %3, %c0_i32_60] : memref<2x72x10x256xf32, #tpu.memory_space<any>> -> memref<1x72x1x256xf32, #tpu.memory_space<any>>
      %99 = tpu.memref_squeeze %98 : memref<1x72x1x256xf32, #tpu.memory_space<any>> -> memref<72x256xf32, #tpu.memory_space<any>>
      %c0_i32_61 = arith.constant 0 : i32
      %c0_i32_62 = arith.constant 0 : i32
      %100 = tpu.memref_slice %arg6[%97, %c0_i32_61, %c0_i32_62] : memref<4x72x256xf32, #tpu.memory_space<vmem>> -> memref<1x72x256xf32, #tpu.memory_space<vmem>>
      %101 = tpu.memref_squeeze %100 : memref<1x72x256xf32, #tpu.memory_space<vmem>> -> memref<72x256xf32, #tpu.memory_space<vmem>>
      %102 = tpu.memref_slice %arg7[%97] : memref<4x!tpu.dma_semaphore, #tpu.memory_space<semaphore_mem>> -> memref<1x!tpu.dma_semaphore, #tpu.memory_space<semaphore_mem>>
      %103 = tpu.memref_squeeze %102 : memref<1x!tpu.dma_semaphore, #tpu.memory_space<semaphore_mem>> -> memref<!tpu.dma_semaphore, #tpu.memory_space<semaphore_mem>>
      tpu.enqueue_dma source(%99 : memref<72x256xf32, #tpu.memory_space<any>>) target(%101 : memref<72x256xf32, #tpu.memory_space<vmem>>) target_semaphore(%103 : memref<!tpu.dma_semaphore, #tpu.memory_space<semaphore_mem>>)
    } else {
    }
    %c0_i32_2 = arith.constant 0 : i32
    %7 = arith.cmpi eq, %arg1, %c0_i32_2 : i32
    %8 = arith.extui %7 : i1 to i32
    %c0_i32_3 = arith.constant 0 : i32
    %9 = arith.cmpi ne, %8, %c0_i32_3 : i32
    scf.if %9 {
      %c0_i32_53 = arith.constant 0 : i32
      %c0_i32_54 = arith.constant 0 : i32
      %c0_i32_55 = arith.constant 0 : i32
      %c0_i32_56 = arith.constant 0 : i32
      %c0_i32_57 = arith.constant 0 : i32
      %88 = tpu.memref_slice %arg2[%arg0, %c0_i32_56, %c0_i32_53, %c0_i32_57] : memref<2x72x10x256xf32, #tpu.memory_space<any>> -> memref<1x72x1x256xf32, #tpu.memory_space<any>>
      %89 = tpu.memref_squeeze %88 : memref<1x72x1x256xf32, #tpu.memory_space<any>> -> memref<72x256xf32, #tpu.memory_space<any>>
      %c0_i32_58 = arith.constant 0 : i32
      %c0_i32_59 = arith.constant 0 : i32
      %90 = tpu.memref_slice %arg6[%c0_i32_54, %c0_i32_58, %c0_i32_59] : memref<4x72x256xf32, #tpu.memory_space<vmem>> -> memref<1x72x256xf32, #tpu.memory_space<vmem>>
      %91 = tpu.memref_squeeze %90 : memref<1x72x256xf32, #tpu.memory_space<vmem>> -> memref<72x256xf32, #tpu.memory_space<vmem>>
      %92 = tpu.memref_slice %arg7[%c0_i32_55] : memref<4x!tpu.dma_semaphore, #tpu.memory_space<semaphore_mem>> -> memref<1x!tpu.dma_semaphore, #tpu.memory_space<semaphore_mem>>
      %93 = tpu.memref_squeeze %92 : memref<1x!tpu.dma_semaphore, #tpu.memory_space<semaphore_mem>> -> memref<!tpu.dma_semaphore, #tpu.memory_space<semaphore_mem>>
      tpu.wait_dma2 semaphore(%93 : memref<!tpu.dma_semaphore, #tpu.memory_space<semaphore_mem>>) src(%89 : memref<72x256xf32, #tpu.memory_space<any>>) dst(%91 : memref<72x256xf32, #tpu.memory_space<vmem>>)
      %c1_i32_60 = arith.constant 1 : i32
      %c1_i32_61 = arith.constant 1 : i32
      %c1_i32_62 = arith.constant 1 : i32
      %c0_i32_63 = arith.constant 0 : i32
      %c0_i32_64 = arith.constant 0 : i32
      %94 = tpu.memref_slice %arg2[%arg0, %c0_i32_63, %c1_i32_60, %c0_i32_64] : memref<2x72x10x256xf32, #tpu.memory_space<any>> -> memref<1x72x1x256xf32, #tpu.memory_space<any>>
      %95 = tpu.memref_squeeze %94 : memref<1x72x1x256xf32, #tpu.memory_space<any>> -> memref<72x256xf32, #tpu.memory_space<any>>
      %c0_i32_65 = arith.constant 0 : i32
      %c0_i32_66 = arith.constant 0 : i32
      %96 = tpu.memref_slice %arg6[%c1_i32_61, %c0_i32_65, %c0_i32_66] : memref<4x72x256xf32, #tpu.memory_space<vmem>> -> memref<1x72x256xf32, #tpu.memory_space<vmem>>
      %97 = tpu.memref_squeeze %96 : memref<1x72x256xf32, #tpu.memory_space<vmem>> -> memref<72x256xf32, #tpu.memory_space<vmem>>
      %98 = tpu.memref_slice %arg7[%c1_i32_62] : memref<4x!tpu.dma_semaphore, #tpu.memory_space<semaphore_mem>> -> memref<1x!tpu.dma_semaphore, #tpu.memory_space<semaphore_mem>>
      %99 = tpu.memref_squeeze %98 : memref<1x!tpu.dma_semaphore, #tpu.memory_space<semaphore_mem>> -> memref<!tpu.dma_semaphore, #tpu.memory_space<semaphore_mem>>
      tpu.wait_dma2 semaphore(%99 : memref<!tpu.dma_semaphore, #tpu.memory_space<semaphore_mem>>) src(%95 : memref<72x256xf32, #tpu.memory_space<any>>) dst(%97 : memref<72x256xf32, #tpu.memory_space<vmem>>)
    } else {
    }
    %c2_i32 = arith.constant 2 : i32
    %10 = arith.addi %arg1, %c2_i32 : i32
    %c2_i32_4 = arith.constant 2 : i32
    %11 = arith.addi %arg1, %c2_i32_4 : i32
    %c4_i32 = arith.constant 4 : i32
    %c0_i32_5 = arith.constant 0 : i32
    %12 = arith.cmpi eq, %c4_i32, %c0_i32_5 : i32
    %c1_i32 = arith.constant 1 : i32
    %13 = arith.select %12, %c1_i32, %c4_i32 : i32
    %14 = arith.remsi %11, %13 : i32
    %c0_i32_6 = arith.constant 0 : i32
    %15 = arith.cmpi ne, %14, %c0_i32_6 : i32
    %c0_i32_7 = arith.constant 0 : i32
    %16 = arith.cmpi slt, %14, %c0_i32_7 : i32
    %c0_i32_8 = arith.constant 0 : i32
    %17 = arith.cmpi slt, %13, %c0_i32_8 : i32
    %18 = arith.xori %16, %17 : i1
    %19 = arith.andi %18, %15 : i1
    %20 = arith.addi %14, %13 : i32
    %21 = arith.select %19, %20, %14 : i32
    %c0_i32_9 = arith.constant 0 : i32
    %c0_i32_10 = arith.constant 0 : i32
    %22 = tpu.memref_slice %arg2[%arg0, %c0_i32_9, %10, %c0_i32_10] : memref<2x72x10x256xf32, #tpu.memory_space<any>> -> memref<1x72x1x256xf32, #tpu.memory_space<any>>
    %23 = tpu.memref_squeeze %22 : memref<1x72x1x256xf32, #tpu.memory_space<any>> -> memref<72x256xf32, #tpu.memory_space<any>>
    %c0_i32_11 = arith.constant 0 : i32
    %c0_i32_12 = arith.constant 0 : i32
    %24 = tpu.memref_slice %arg6[%21, %c0_i32_11, %c0_i32_12] : memref<4x72x256xf32, #tpu.memory_space<vmem>> -> memref<1x72x256xf32, #tpu.memory_space<vmem>>
    %25 = tpu.memref_squeeze %24 : memref<1x72x256xf32, #tpu.memory_space<vmem>> -> memref<72x256xf32, #tpu.memory_space<vmem>>
    %26 = tpu.memref_slice %arg7[%21] : memref<4x!tpu.dma_semaphore, #tpu.memory_space<semaphore_mem>> -> memref<1x!tpu.dma_semaphore, #tpu.memory_space<semaphore_mem>>
    %27 = tpu.memref_squeeze %26 : memref<1x!tpu.dma_semaphore, #tpu.memory_space<semaphore_mem>> -> memref<!tpu.dma_semaphore, #tpu.memory_space<semaphore_mem>>
    tpu.wait_dma2 semaphore(%27 : memref<!tpu.dma_semaphore, #tpu.memory_space<semaphore_mem>>) src(%23 : memref<72x256xf32, #tpu.memory_space<any>>) dst(%25 : memref<72x256xf32, #tpu.memory_space<vmem>>)
    %c0 = arith.constant 0 : index
    %c0_13 = arith.constant 0 : index
    %c0_14 = arith.constant 0 : index
    %28 = vector.load %arg3[%c0, %c0_13, %c0_14] : memref<3x16x72xf32, #tpu.memory_space<vmem>>, vector<1x16x72xf32>
    %29 = vector.shape_cast %28 : vector<1x16x72xf32> to vector<16x72xf32>
    %c4_i32_15 = arith.constant 4 : i32
    %c0_i32_16 = arith.constant 0 : i32
    %30 = arith.cmpi eq, %c4_i32_15, %c0_i32_16 : i32
    %c1_i32_17 = arith.constant 1 : i32
    %31 = arith.select %30, %c1_i32_17, %c4_i32_15 : i32
    %32 = arith.remsi %arg1, %31 : i32
    %c0_i32_18 = arith.constant 0 : i32
    %33 = arith.cmpi ne, %32, %c0_i32_18 : i32
    %c0_i32_19 = arith.constant 0 : i32
    %34 = arith.cmpi slt, %32, %c0_i32_19 : i32
    %c0_i32_20 = arith.constant 0 : i32
    %35 = arith.cmpi slt, %31, %c0_i32_20 : i32
    %36 = arith.xori %34, %35 : i1
    %37 = arith.andi %36, %33 : i1
    %38 = arith.addi %32, %31 : i32
    %39 = arith.select %37, %38, %32 : i32
    %40 = arith.index_cast %39 : i32 to index
    %c0_21 = arith.constant 0 : index
    %c0_22 = arith.constant 0 : index
    %41 = vector.load %arg6[%40, %c0_21, %c0_22] : memref<4x72x256xf32, #tpu.memory_space<vmem>>, vector<1x72x256xf32>
    %42 = vector.shape_cast %41 : vector<1x72x256xf32> to vector<72x256xf32>
    %cst = arith.constant dense<0.000000e+00> : vector<16x256xf32>
    %43 = tpu.matmul %29, %42, %cst {dimension_numbers = #tpu.dot_dimension_numbers<[1], [0], [0], [1], [0, 0, 1, 1], [], []>} : vector<16x72xf32>, vector<72x256xf32>, vector<16x256xf32> -> vector<16x256xf32>
    %c1 = arith.constant 1 : index
    %c0_23 = arith.constant 0 : index
    %c0_24 = arith.constant 0 : index
    %44 = vector.load %arg3[%c1, %c0_23, %c0_24] : memref<3x16x72xf32, #tpu.memory_space<vmem>>, vector<1x16x72xf32>
    %45 = vector.shape_cast %44 : vector<1x16x72xf32> to vector<16x72xf32>
    %c1_i32_25 = arith.constant 1 : i32
    %46 = arith.addi %arg1, %c1_i32_25 : i32
    %c4_i32_26 = arith.constant 4 : i32
    %c0_i32_27 = arith.constant 0 : i32
    %47 = arith.cmpi eq, %c4_i32_26, %c0_i32_27 : i32
    %c1_i32_28 = arith.constant 1 : i32
    %48 = arith.select %47, %c1_i32_28, %c4_i32_26 : i32
    %49 = arith.remsi %46, %48 : i32
    %c0_i32_29 = arith.constant 0 : i32
    %50 = arith.cmpi ne, %49, %c0_i32_29 : i32
    %c0_i32_30 = arith.constant 0 : i32
    %51 = arith.cmpi slt, %49, %c0_i32_30 : i32
    %c0_i32_31 = arith.constant 0 : i32
    %52 = arith.cmpi slt, %48, %c0_i32_31 : i32
    %53 = arith.xori %51, %52 : i1
    %54 = arith.andi %53, %50 : i1
    %55 = arith.addi %49, %48 : i32
    %56 = arith.select %54, %55, %49 : i32
    %57 = arith.index_cast %56 : i32 to index
    %c0_32 = arith.constant 0 : index
    %c0_33 = arith.constant 0 : index
    %58 = vector.load %arg6[%57, %c0_32, %c0_33] : memref<4x72x256xf32, #tpu.memory_space<vmem>>, vector<1x72x256xf32>
    %59 = vector.shape_cast %58 : vector<1x72x256xf32> to vector<72x256xf32>
    %cst_34 = arith.constant dense<0.000000e+00> : vector<16x256xf32>
    %60 = tpu.matmul %45, %59, %cst_34 {dimension_numbers = #tpu.dot_dimension_numbers<[1], [0], [0], [1], [0, 0, 1, 1], [], []>} : vector<16x72xf32>, vector<72x256xf32>, vector<16x256xf32> -> vector<16x256xf32>
    %61 = arith.addf %43, %60 : vector<16x256xf32>
    %c2 = arith.constant 2 : index
    %c0_35 = arith.constant 0 : index
    %c0_36 = arith.constant 0 : index
    %62 = vector.load %arg3[%c2, %c0_35, %c0_36] : memref<3x16x72xf32, #tpu.memory_space<vmem>>, vector<1x16x72xf32>
    %63 = vector.shape_cast %62 : vector<1x16x72xf32> to vector<16x72xf32>
    %c2_i32_37 = arith.constant 2 : i32
    %64 = arith.addi %arg1, %c2_i32_37 : i32
    %c4_i32_38 = arith.constant 4 : i32
    %c0_i32_39 = arith.constant 0 : i32
    %65 = arith.cmpi eq, %c4_i32_38, %c0_i32_39 : i32
    %c1_i32_40 = arith.constant 1 : i32
    %66 = arith.select %65, %c1_i32_40, %c4_i32_38 : i32
    %67 = arith.remsi %64, %66 : i32
    %c0_i32_41 = arith.constant 0 : i32
    %68 = arith.cmpi ne, %67, %c0_i32_41 : i32
    %c0_i32_42 = arith.constant 0 : i32
    %69 = arith.cmpi slt, %67, %c0_i32_42 : i32
    %c0_i32_43 = arith.constant 0 : i32
    %70 = arith.cmpi slt, %66, %c0_i32_43 : i32
    %71 = arith.xori %69, %70 : i1
    %72 = arith.andi %71, %68 : i1
    %73 = arith.addi %67, %66 : i32
    %74 = arith.select %72, %73, %67 : i32
    %75 = arith.index_cast %74 : i32 to index
    %c0_44 = arith.constant 0 : index
    %c0_45 = arith.constant 0 : index
    %76 = vector.load %arg6[%75, %c0_44, %c0_45] : memref<4x72x256xf32, #tpu.memory_space<vmem>>, vector<1x72x256xf32>
    %77 = vector.shape_cast %76 : vector<1x72x256xf32> to vector<72x256xf32>
    %cst_46 = arith.constant dense<0.000000e+00> : vector<16x256xf32>
    %78 = tpu.matmul %63, %77, %cst_46 {dimension_numbers = #tpu.dot_dimension_numbers<[1], [0], [0], [1], [0, 0, 1, 1], [], []>} : vector<16x72xf32>, vector<72x256xf32>, vector<16x256xf32> -> vector<16x256xf32>
    %79 = arith.addf %61, %78 : vector<16x256xf32>
    %c0_47 = arith.constant 0 : index
    %c0_48 = arith.constant 0 : index
    %80 = vector.load %arg4[%c0_47, %c0_48] : memref<16x1xf32, #tpu.memory_space<vmem>>, vector<16x1xf32>
    %81 = vector.broadcast %80 : vector<16x1xf32> to vector<16x256xf32>
    %82 = arith.addf %79, %81 : vector<16x256xf32>
    %cst_49 = arith.constant 0.000000e+00 : f32
    %83 = vector.broadcast %cst_49 : f32 to vector<16x256xf32>
    %84 = arith.maximumf %82, %83 : vector<16x256xf32>
    %c0_50 = arith.constant 0 : index
    %c0_51 = arith.constant 0 : index
    %c0_52 = arith.constant 0 : index
    %85 = vector.load %arg5[%c0_50, %c0_51, %c0_52] : memref<1x16x256xf32, #tpu.memory_space<vmem>>, vector<1x16x256xf32>
    %86 = vector.shape_cast %85 : vector<1x16x256xf32> to vector<16x256xf32>
    %87 = vector.shape_cast %84 : vector<16x256xf32> to vector<1x16x256xf32>
    tpu.vector_store %arg5[%c0_50, %c0_51, %c0_52], %87 {strides = array<i32>} : memref<1x16x256xf32, #tpu.memory_space<vmem>>, vector<1x16x256xf32>,
    return
  }
  func.func @transform_1(%arg0: i32, %arg1: i32) -> (i32, i32, i32) {
    %c0_i32 = arith.constant 0 : i32
    %c0_i32_0 = arith.constant 0 : i32
    %c0_i32_1 = arith.constant 0 : i32
    %c0_i32_2 = arith.constant 0 : i32
    return %c0_i32, %c0_i32_0, %c0_i32_1 : i32, i32, i32
  }
  func.func @transform_2(%arg0: i32, %arg1: i32) -> (i32, i32) {
    %c0_i32 = arith.constant 0 : i32
    %c0_i32_0 = arith.constant 0 : i32
    %c0_i32_1 = arith.constant 0 : i32
    return %c0_i32, %c0_i32_0 : i32, i32
  }
  func.func @transform_3(%arg0: i32, %arg1: i32) -> (i32, i32, i32) {
    %c0_i32 = arith.constant 0 : i32
    %c0_i32_0 = arith.constant 0 : i32
    return %arg0, %c0_i32, %arg1 : i32, i32, i32
  }
}

</mosaic_0001>

<bundles_post_ra>
// kernel: us_block_nounpool.1
= control target key start
LH: loop header
LB: loop body
LE: loop exit
PB: predicated region body
PF: predicated region fallthrough
CT: control target
= control target key end

     0   :  { %s4112_s12 = smov 0   ;;  %s4114_s13 = smov 0   ;;  %s5052_s0 = inlined_call_operand.vmem [shape: f32[2,72,10,256], index: 0, kind: input, shape index: {}]   ;;  %s5053_s1 = inlined_call_operand.vmem [shape: f32[3,16,72], index: 1, kind: input, shape index: {}]   ;;  %s5054_s2 = inlined_call_operand.vmem [shape: f32[16,1], index: 2, kind: input, shape index: {}]   ;;  %s5055_s3 = inlined_call_operand.vmem [shape: f32[2,16,2048], index: 3, kind: output, shape index: {}]  }
   0x1   :  { %s4116_s14 = smov 0   ;;  %s4118_s15 = smov 0  }
   0x2   :  { %s4120_s16 = smov 0   ;;  %s4122_s17 = smov 0  }
   0x3   :  { %s4124_s18 = smov 0  }
   0x4 LB: > { %s22_s19 = sadd.s32 1, %s4080_s16  ;;  %s25_s20 = sadd.s32 1, %s4084_s17  ;;  %s4088_s18 = sphi %s4124_s18, %s13_s18   ;;  %s4084_s17 = sphi %s4122_s17, %s5062_s17   ;;  %s4080_s16 = sphi %s4120_s16, %s5061_s16   ;;  %s4076_s15 = sphi %s4118_s15, %s5060_s15   ;;  %s4072_s14 = sphi %s4116_s14, %s5059_s14   ;;  %s4068_s13 = sphi %s4114_s13, %s5058_s13   ;;  %s4064_s12 = sphi %s4112_s12, %s5057_s12  }
   0x5   : > { %p23_p0 = scmp.ge.s32.totalorder %s22_s19, 8  ;;  %s3270_s21 = sadd.s32 4294967295, %s4088_s18  }
   0x6   : > { %p86_p1 = scmp.ne.s32.totalorder %s4068_s13, %s4064_s12  ;;  %p87_p2 = scmp.eq.s32.totalorder %s3270_s21, 15 }
   0x7   : > { %s5064_s19 = smov (%p23_p0, %s22_s19), 0  ;;  %s5066_s20 = smov (!%p23_p0, %s25_s20), %s4084_s17 }
   0x8   : > { %s72_s22 = ssub.s32 %s4080_s16, %s5064_s19  ;;  %p27_p3 = scmp.ge.s32.totalorder %s5066_s20, 2 }
   0x9   : > { %p3273_p4 = scmp.ge.s32.totalorder %s4088_s18, 1  ;;  %p4158_p5 = por %p87_p2, %p86_p1 }
   0xa   : > { %p117_p6 = scmp.lt.s32.totalorder %s4088_s18, 17  ;;  %s5068_s20 = smov (%p27_p3, %s5066_s20), 0 }
   0xb   : > { %s71_s24 = ssub.s32 %s4084_s17, %s5068_s20  ;;  %s76_s26 = sadd.s32 1, %s4068_s13 }
   0xc   : > { %p118_p7 = pnand %p3273_p4, %p117_p6  ;;  %s73_s25 = sor.u32 %s72_s22, %s71_s24 }
   0xd   : > { %p74_p8 = scmp.eq.s32.totalorder %s73_s25, 0  ;;  %s130_s28 = sand.u32 (!%p118_p7), 1, %s4064_s12  }
   0xe   : > { %121 = sbr.rel (%p118_p7) target bundleno = 735 (0x2df), region = 28  ;;  %s3274_s29 = sshll.u32 (!%p118_p7), %s130_s28, 5 }
   0xf   : > { %s4169_s27 = scalar_select %p74_p8, %s4068_s13, %s76_s26  }
  0x10   : > { %s4172_s30 = scalar_lea.vmem (!%p118_p7), [#allocation4], %s3274_s29  ;;  %p3275_p9 = scmp.ne.s32.totalorder (!%p118_p7), %s4072_s14, 0 }
  0x15   : > { %137 = sbr.rel (%p3275_p9) target bundleno = 321 (0x141), region = 32 }
  0x16   : > { %s138_s4 = smul.u32 (!%p3275_p9), 2304, %s4076_s15 }
  0x18   : > { %s4179_s7 = scalar_lea.vmem (!%p3275_p9), %s5052_s0, %s138_s4 }
  0x19   : > { %v157_v0 = vld [vmem:[%s4179_s7] sm:$0x1] (!%p3275_p9)  ;;  %v173_v8 = vld [vmem:[%s4179_s7 + $0x8] sm:$0x1] (!%p3275_p9) }
  0x1a   : > { %v159_v1 = vld [vmem:[%s4179_s7 + $0x20] sm:$0x1] (!%p3275_p9)  ;;  %158 = vst [vmem:[#allocation2] sm:$0x1] (!%p3275_p9), %v157_v0  ;;  %174 = vst [vmem:[#allocation2 + $0x8] sm:$0x1] (!%p3275_p9), %v173_v8 }
  0x1b   : > { %v161_v2 = vld [vmem:[%s4179_s7 + $0x40] sm:$0x1] (!%p3275_p9)  ;;  %160 = vst [vmem:[#allocation2 + $0x1] sm:$0x1] (!%p3275_p9), %v159_v1  ;;  %v175_v9 = vld [vmem:[%s4179_s7 + $0x28] sm:$0x1] (!%p3275_p9) }
  0x1c   : > { %162 = vst [vmem:[#allocation2 + $0x2] sm:$0x1] %v161_v2  ;;  %v163_v3 = vld [vmem:[%s4179_s7 + $0x60] sm:$0x1]  ;;  %v177_v10 = vld [vmem:[%s4179_s7 + $0x48] sm:$0x1] }
  0x1d   : > { %v165_v4 = vld [vmem:[%s4179_s7 + $0x80] sm:$0x1]  ;;  %164 = vst [vmem:[#allocation2 + $0x3] sm:$0x1] %v163_v3  ;;  %v179_v11 = vld [vmem:[%s4179_s7 + $0x68] sm:$0x1] }
  0x1e   : > { %v167_v5 = vld [vmem:[%s4179_s7 + $0xa0] sm:$0x1]  ;;  %166 = vst [vmem:[#allocation2 + $0x4] sm:$0x1] %v165_v4  ;;  %176 = vst [vmem:[#allocation2 + $0x9] sm:$0x1] %v175_v9 }
  0x1f   : > { %168 = vst [vmem:[#allocation2 + $0x5] sm:$0x1] %v167_v5  ;;  %v169_v6 = vld [vmem:[%s4179_s7 + $0xc0] sm:$0x1]  ;;  %178 = vst [vmem:[#allocation2 + $0xa] sm:$0x1] %v177_v10 }
  0x20   : > { %v171_v7 = vld [vmem:[%s4179_s7 + $0xe0] sm:$0x1]  ;;  %170 = vst [vmem:[#allocation2 + $0x6] sm:$0x1] %v169_v6  ;;  %180 = vst [vmem:[#allocation2 + $0xb] sm:$0x1] %v179_v11 }
  0x21   : > { %172 = vst [vmem:[#allocation2 + $0x7] sm:$0x1] %v171_v7  ;;  %v181_v12 = vld [vmem:[%s4179_s7 + $0x88] sm:$0x1]  ;;  %v189_v16 = vld [vmem:[%s4179_s7 + $0x100] sm:$0x1] }
  0x22   : > { %v183_v13 = vld [vmem:[%s4179_s7 + $0xa8] sm:$0x1]  ;;  %182 = vst [vmem:[#allocation2 + $0xc] sm:$0x1] %v181_v12  ;;  %v191_v17 = vld [vmem:[%s4179_s7 + $0x120] sm:$0x1] }
  0x23   : > { %v185_v14 = vld [vmem:[%s4179_s7 + $0xc8] sm:$0x1]  ;;  %184 = vst [vmem:[#allocation2 + $0xd] sm:$0x1] %v183_v13  ;;  %190 = vst [vmem:[#allocation2 + $0x10] sm:$0x1] %v189_v16 }
  0x24   : > { %186 = vst [vmem:[#allocation2 + $0xe] sm:$0x1] %v185_v14  ;;  %v187_v15 = vld [vmem:[%s4179_s7 + $0xe8] sm:$0x1]  ;;  %192 = vst [vmem:[#allocation2 + $0x11] sm:$0x1] %v191_v17 }
  0x25   : > { %188 = vst [vmem:[#allocation2 + $0xf] sm:$0x1] %v187_v15  ;;  %v193_v18 = vld [vmem:[%s4179_s7 + $0x140] sm:$0x1]  ;;  %v205_v24 = vld [vmem:[%s4179_s7 + $0x108] sm:$0x1] }
  0x26   : > { %v195_v19 = vld [vmem:[%s4179_s7 + $0x160] sm:$0x1]  ;;  %194 = vst [vmem:[#allocation2 + $0x12] sm:$0x1] %v193_v18  ;;  %v207_v25 = vld [vmem:[%s4179_s7 + $0x128] sm:$0x1] }
  0x27   : > { %v197_v20 = vld [vmem:[%s4179_s7 + $0x180] sm:$0x1]  ;;  %196 = vst [vmem:[#allocation2 + $0x13] sm:$0x1] %v195_v19  ;;  %v209_v26 = vld [vmem:[%s4179_s7 + $0x148] sm:$0x1] }
  0x28   : > { %198 = vst [vmem:[#allocation2 + $0x14] sm:$0x1] %v197_v20  ;;  %v199_v21 = vld [vmem:[%s4179_s7 + $0x1a0] sm:$0x1]  ;;  %206 = vst [vmem:[#allocation2 + $0x18] sm:$0x1] %v205_v24 }
  0x29   : > { %v201_v22 = vld [vmem:[%s4179_s7 + $0x1c0] sm:$0x1]  ;;  %200 = vst [vmem:[#allocation2 + $0x15] sm:$0x1] %v199_v21  ;;  %208 = vst [vmem:[#allocation2 + $0x19] sm:$0x1] %v207_v25 }
  0x2a   : > { %v203_v23 = vld [vmem:[%s4179_s7 + $0x1e0] sm:$0x1]  ;;  %202 = vst [vmem:[#allocation2 + $0x16] sm:$0x1] %v201_v22  ;;  %210 = vst [vmem:[#allocation2 + $0x1a] sm:$0x1] %v209_v26 }
  0x2b   : > { %204 = vst [vmem:[#allocation2 + $0x17] sm:$0x1] %v203_v23  ;;  %v211_v27 = vld [vmem:[%s4179_s7 + $0x168] sm:$0x1]  ;;  %v221_v32 = vld [vmem:[%s4179_s7 + $0x200] sm:$0x1] }
  0x2c   : > { %v213_v28 = vld [vmem:[%s4179_s7 + $0x188] sm:$0x1]  ;;  %212 = vst [vmem:[#allocation2 + $0x1b] sm:$0x1] %v211_v27  ;;  %222 = vst [vmem:[#allocation2 + $0x20] sm:$0x1] %v221_v32 }
  0x2d   : > { %v215_v29 = vld [vmem:[%s4179_s7 + $0x1a8] sm:$0x1]  ;;  %214 = vst [vmem:[#allocation2 + $0x1c] sm:$0x1] %v213_v28  ;;  %v223_v33 = vld [vmem:[%s4179_s7 + $0x220] sm:$0x1] }
  0x2e   : > { %216 = vst [vmem:[#allocation2 + $0x1d] sm:$0x1] %v215_v29  ;;  %v217_v30 = vld [vmem:[%s4179_s7 + $0x1c8] sm:$0x1]  ;;  %v225_v34 = vld [vmem:[%s4179_s7 + $0x240] sm:$0x1] }
  0x2f   : > { %v219_v31 = vld [vmem:[%s4179_s7 + $0x1e8] sm:$0x1]  ;;  %218 = vst [vmem:[#allocation2 + $0x1e] sm:$0x1] %v217_v30  ;;  %v227_v35 = vld [vmem:[%s4179_s7 + $0x260] sm:$0x1] }
  0x30   : > { %220 = vst [vmem:[#allocation2 + $0x1f] sm:$0x1] %v219_v31  ;;  %224 = vst [vmem:[#allocation2 + $0x21] sm:$0x1] %v223_v33  ;;  %v229_v36 = vld [vmem:[%s4179_s7 + $0x280] sm:$0x1] }
  0x31   : > { %226 = vst [vmem:[#allocation2 + $0x22] sm:$0x1] %v225_v34  ;;  %228 = vst [vmem:[#allocation2 + $0x23] sm:$0x1] %v227_v35  ;;  %v231_v37 = vld [vmem:[%s4179_s7 + $0x2a0] sm:$0x1] }
  0x32   : > { %v233_v38 = vld [vmem:[%s4179_s7 + $0x2c0] sm:$0x1]  ;;  %230 = vst [vmem:[#allocation2 + $0x24] sm:$0x1] %v229_v36  ;;  %232 = vst [vmem:[#allocation2 + $0x25] sm:$0x1] %v231_v37 }
  0x33   : > { %234 = vst [vmem:[#allocation2 + $0x26] sm:$0x1] %v233_v38  ;;  %v235_v39 = vld [vmem:[%s4179_s7 + $0x2e0] sm:$0x1]  ;;  %v237_v40 = vld [vmem:[%s4179_s7 + $0x208] sm:$0x1] }
  0x34   : > { %v239_v41 = vld [vmem:[%s4179_s7 + $0x228] sm:$0x1]  ;;  %236 = vst [vmem:[#allocation2 + $0x27] sm:$0x1] %v235_v39  ;;  %238 = vst [vmem:[#allocation2 + $0x28] sm:$0x1] %v237_v40 }
  0x35   : > { %240 = vst [vmem:[#allocation2 + $0x29] sm:$0x1] %v239_v41  ;;  %v241_v42 = vld [vmem:[%s4179_s7 + $0x248] sm:$0x1]  ;;  %v253_v48 = vld [vmem:[%s4179_s7 + $0x300] sm:$0x1] }
  0x36   : > { %v243_v43 = vld [vmem:[%s4179_s7 + $0x268] sm:$0x1]  ;;  %242 = vst [vmem:[#allocation2 + $0x2a] sm:$0x1] %v241_v42  ;;  %v255_v49 = vld [vmem:[%s4179_s7 + $0x320] sm:$0x1] }
  0x37   : > { %v245_v44 = vld [vmem:[%s4179_s7 + $0x288] sm:$0x1]  ;;  %244 = vst [vmem:[#allocation2 + $0x2b] sm:$0x1] %v243_v43  ;;  %v257_v50 = vld [vmem:[%s4179_s7 + $0x340] sm:$0x1] }
  0x38   : > { %246 = vst [vmem:[#allocation2 + $0x2c] sm:$0x1] %v245_v44  ;;  %v247_v45 = vld [vmem:[%s4179_s7 + $0x2a8] sm:$0x1]  ;;  %254 = vst [vmem:[#allocation2 + $0x30] sm:$0x1] %v253_v48 }
  0x39   : > { %v249_v46 = vld [vmem:[%s4179_s7 + $0x2c8] sm:$0x1]  ;;  %248 = vst [vmem:[#allocation2 + $0x2d] sm:$0x1] %v247_v45  ;;  %256 = vst [vmem:[#allocation2 + $0x31] sm:$0x1] %v255_v49 }
  0x3a   : > { %v251_v47 = vld [vmem:[%s4179_s7 + $0x2e8] sm:$0x1]  ;;  %250 = vst [vmem:[#allocation2 + $0x2e] sm:$0x1] %v249_v46  ;;  %258 = vst [vmem:[#allocation2 + $0x32] sm:$0x1] %v257_v50 }
  0x3b   : > { %252 = vst [vmem:[#allocation2 + $0x2f] sm:$0x1] %v251_v47  ;;  %v259_v51 = vld [vmem:[%s4179_s7 + $0x360] sm:$0x1]  ;;  %v269_v56 = vld [vmem:[%s4179_s7 + $0x308] sm:$0x1] }
  0x3c   : > { %v261_v52 = vld [vmem:[%s4179_s7 + $0x380] sm:$0x1]  ;;  %260 = vst [vmem:[#allocation2 + $0x33] sm:$0x1] %v259_v51  ;;  %270 = vst [vmem:[#allocation2 + $0x38] sm:$0x1] %v269_v56 }
  0x3d   : > { %v263_v53 = vld [vmem:[%s4179_s7 + $0x3a0] sm:$0x1]  ;;  %262 = vst [vmem:[#allocation2 + $0x34] sm:$0x1] %v261_v52  ;;  %v271_v57 = vld [vmem:[%s4179_s7 + $0x328] sm:$0x1] }
  0x3e   : > { %264 = vst [vmem:[#allocation2 + $0x35] sm:$0x1] %v263_v53  ;;  %v265_v54 = vld [vmem:[%s4179_s7 + $0x3c0] sm:$0x1]  ;;  %v273_v58 = vld [vmem:[%s4179_s7 + $0x348] sm:$0x1] }
  0x3f   : > { %v267_v55 = vld [vmem:[%s4179_s7 + $0x3e0] sm:$0x1]  ;;  %266 = vst [vmem:[#allocation2 + $0x36] sm:$0x1] %v265_v54  ;;  %v275_v59 = vld [vmem:[%s4179_s7 + $0x368] sm:$0x1] }
  0x40   : > { %268 = vst [vmem:[#allocation2 + $0x37] sm:$0x1] %v267_v55  ;;  %272 = vst [vmem:[#allocation2 + $0x39] sm:$0x1] %v271_v57  ;;  %v277_v60 = vld [vmem:[%s4179_s7 + $0x388] sm:$0x1] }
  0x41   : > { %274 = vst [vmem:[#allocation2 + $0x3a] sm:$0x1] %v273_v58  ;;  %276 = vst [vmem:[#allocation2 + $0x3b] sm:$0x1] %v275_v59  ;;  %v279_v61 = vld [vmem:[%s4179_s7 + $0x3a8] sm:$0x1] }
  0x42   : > { %v281_v62 = vld [vmem:[%s4179_s7 + $0x3c8] sm:$0x1]  ;;  %278 = vst [vmem:[#allocation2 + $0x3c] sm:$0x1] %v277_v60  ;;  %280 = vst [vmem:[#allocation2 + $0x3d] sm:$0x1] %v279_v61 }
  0x43   : > { %282 = vst [vmem:[#allocation2 + $0x3e] sm:$0x1] %v281_v62  ;;  %v283_v63 = vld [vmem:[%s4179_s7 + $0x3e8] sm:$0x1]  ;;  %v285_v0 = vld [vmem:[%s4179_s7 + $0x400] sm:$0x1] }
  0x44   : > { %v287_v1 = vld [vmem:[%s4179_s7 + $0x420] sm:$0x1]  ;;  %284 = vst [vmem:[#allocation2 + $0x3f] sm:$0x1] %v283_v63  ;;  %286 = vst [vmem:[#allocation2 + $0x40] sm:$0x1] %v285_v0 }
  0x45   : > { %288 = vst [vmem:[#allocation2 + $0x41] sm:$0x1] %v287_v1  ;;  %v289_v2 = vld [vmem:[%s4179_s7 + $0x440] sm:$0x1]  ;;  %v301_v8 = vld [vmem:[%s4179_s7 + $0x408] sm:$0x1] }
  0x46   : > { %v291_v3 = vld [vmem:[%s4179_s7 + $0x460] sm:$0x1]  ;;  %290 = vst [vmem:[#allocation2 + $0x42] sm:$0x1] %v289_v2  ;;  %v303_v9 = vld [vmem:[%s4179_s7 + $0x428] sm:$0x1] }
  0x47   : > { %v293_v4 = vld [vmem:[%s4179_s7 + $0x480] sm:$0x1]  ;;  %292 = vst [vmem:[#allocation2 + $0x43] sm:$0x1] %v291_v3  ;;  %v305_v10 = vld [vmem:[%s4179_s7 + $0x448] sm:$0x1] }
  0x48   : > { %294 = vst [vmem:[#allocation2 + $0x44] sm:$0x1] %v293_v4  ;;  %v295_v5 = vld [vmem:[%s4179_s7 + $0x4a0] sm:$0x1]  ;;  %302 = vst [vmem:[#allocation2 + $0x48] sm:$0x1] %v301_v8 }
  0x49   : > { %v297_v6 = vld [vmem:[%s4179_s7 + $0x4c0] sm:$0x1]  ;;  %296 = vst [vmem:[#allocation2 + $0x45] sm:$0x1] %v295_v5  ;;  %304 = vst [vmem:[#allocation2 + $0x49] sm:$0x1] %v303_v9 }
  0x4a   : > { %v299_v7 = vld [vmem:[%s4179_s7 + $0x4e0] sm:$0x1]  ;;  %298 = vst [vmem:[#allocation2 + $0x46] sm:$0x1] %v297_v6  ;;  %306 = vst [vmem:[#allocation2 + $0x4a] sm:$0x1] %v305_v10 }
  0x4b   : > { %300 = vst [vmem:[#allocation2 + $0x47] sm:$0x1] %v299_v7  ;;  %v307_v11 = vld [vmem:[%s4179_s7 + $0x468] sm:$0x1]  ;;  %v317_v16 = vld [vmem:[%s4179_s7 + $0x500] sm:$0x1] }
  0x4c   : > { %v309_v12 = vld [vmem:[%s4179_s7 + $0x488] sm:$0x1]  ;;  %308 = vst [vmem:[#allocation2 + $0x4b] sm:$0x1] %v307_v11  ;;  %318 = vst [vmem:[#allocation2 + $0x50] sm:$0x1] %v317_v16 }
  0x4d   : > { %v311_v13 = vld [vmem:[%s4179_s7 + $0x4a8] sm:$0x1]  ;;  %310 = vst [vmem:[#allocation2 + $0x4c] sm:$0x1] %v309_v12  ;;  %v319_v17 = vld [vmem:[%s4179_s7 + $0x520] sm:$0x1] }
  0x4e   : > { %312 = vst [vmem:[#allocation2 + $0x4d] sm:$0x1] %v311_v13  ;;  %v313_v14 = vld [vmem:[%s4179_s7 + $0x4c8] sm:$0x1]  ;;  %v321_v18 = vld [vmem:[%s4179_s7 + $0x540] sm:$0x1] }
  0x4f   : > { %v315_v15 = vld [vmem:[%s4179_s7 + $0x4e8] sm:$0x1]  ;;  %314 = vst [vmem:[#allocation2 + $0x4e] sm:$0x1] %v313_v14  ;;  %v323_v19 = vld [vmem:[%s4179_s7 + $0x560] sm:$0x1] }
  0x50   : > { %316 = vst [vmem:[#allocation2 + $0x4f] sm:$0x1] %v315_v15  ;;  %320 = vst [vmem:[#allocation2 + $0x51] sm:$0x1] %v319_v17  ;;  %v325_v20 = vld [vmem:[%s4179_s7 + $0x580] sm:$0x1] }
  0x51   : > { %322 = vst [vmem:[#allocation2 + $0x52] sm:$0x1] %v321_v18  ;;  %324 = vst [vmem:[#allocation2 + $0x53] sm:$0x1] %v323_v19  ;;  %v327_v21 = vld [vmem:[%s4179_s7 + $0x5a0] sm:$0x1] }
  0x52   : > { %v329_v22 = vld [vmem:[%s4179_s7 + $0x5c0] sm:$0x1]  ;;  %326 = vst [vmem:[#allocation2 + $0x54] sm:$0x1] %v325_v20  ;;  %328 = vst [vmem:[#allocation2 + $0x55] sm:$0x1] %v327_v21 }
  0x53   : > { %330 = vst [vmem:[#allocation2 + $0x56] sm:$0x1] %v329_v22  ;;  %v331_v23 = vld [vmem:[%s4179_s7 + $0x5e0] sm:$0x1]  ;;  %v333_v24 = vld [vmem:[%s4179_s7 + $0x508] sm:$0x1] }
  0x54   : > { %v335_v25 = vld [vmem:[%s4179_s7 + $0x528] sm:$0x1]  ;;  %332 = vst [vmem:[#allocation2 + $0x57] sm:$0x1] %v331_v23  ;;  %334 = vst [vmem:[#allocation2 + $0x58] sm:$0x1] %v333_v24 }
  0x55   : > { %336 = vst [vmem:[#allocation2 + $0x59] sm:$0x1] %v335_v25  ;;  %v337_v26 = vld [vmem:[%s4179_s7 + $0x548] sm:$0x1]  ;;  %v349_v32 = vld [vmem:[%s4179_s7 + $0x600] sm:$0x1] }
  0x56   : > { %v339_v27 = vld [vmem:[%s4179_s7 + $0x568] sm:$0x1]  ;;  %338 = vst [vmem:[#allocation2 + $0x5a] sm:$0x1] %v337_v26  ;;  %v351_v33 = vld [vmem:[%s4179_s7 + $0x620] sm:$0x1] }
  0x57   : > { %v341_v28 = vld [vmem:[%s4179_s7 + $0x588] sm:$0x1]  ;;  %340 = vst [vmem:[#allocation2 + $0x5b] sm:$0x1] %v339_v27  ;;  %v353_v34 = vld [vmem:[%s4179_s7 + $0x640] sm:$0x1] }
  0x58   : > { %342 = vst [vmem:[#allocation2 + $0x5c] sm:$0x1] %v341_v28  ;;  %v343_v29 = vld [vmem:[%s4179_s7 + $0x5a8] sm:$0x1]  ;;  %350 = vst [vmem:[#allocation2 + $0x60] sm:$0x1] %v349_v32 }
  0x59   : > { %v345_v30 = vld [vmem:[%s4179_s7 + $0x5c8] sm:$0x1]  ;;  %344 = vst [vmem:[#allocation2 + $0x5d] sm:$0x1] %v343_v29  ;;  %352 = vst [vmem:[#allocation2 + $0x61] sm:$0x1] %v351_v33 }
  0x5a   : > { %v347_v31 = vld [vmem:[%s4179_s7 + $0x5e8] sm:$0x1]  ;;  %346 = vst [vmem:[#allocation2 + $0x5e] sm:$0x1] %v345_v30  ;;  %354 = vst [vmem:[#allocation2 + $0x62] sm:$0x1] %v353_v34 }
  0x5b   : > { %348 = vst [vmem:[#allocation2 + $0x5f] sm:$0x1] %v347_v31  ;;  %v355_v35 = vld [vmem:[%s4179_s7 + $0x660] sm:$0x1]  ;;  %v365_v40 = vld [vmem:[%s4179_s7 + $0x608] sm:$0x1] }
  0x5c   : > { %v357_v36 = vld [vmem:[%s4179_s7 + $0x680] sm:$0x1]  ;;  %356 = vst [vmem:[#allocation2 + $0x63] sm:$0x1] %v355_v35  ;;  %366 = vst [vmem:[#allocation2 + $0x68] sm:$0x1] %v365_v40 }
  0x5d   : > { %v359_v37 = vld [vmem:[%s4179_s7 + $0x6a0] sm:$0x1]  ;;  %358 = vst [vmem:[#allocation2 + $0x64] sm:$0x1] %v357_v36  ;;  %v367_v41 = vld [vmem:[%s4179_s7 + $0x628] sm:$0x1] }
  0x5e   : > { %360 = vst [vmem:[#allocation2 + $0x65] sm:$0x1] %v359_v37  ;;  %v361_v38 = vld [vmem:[%s4179_s7 + $0x6c0] sm:$0x1]  ;;  %v369_v42 = vld [vmem:[%s4179_s7 + $0x648] sm:$0x1] }
  0x5f   : > { %v363_v39 = vld [vmem:[%s4179_s7 + $0x6e0] sm:$0x1]  ;;  %362 = vst [vmem:[#allocation2 + $0x66] sm:$0x1] %v361_v38  ;;  %v371_v43 = vld [vmem:[%s4179_s7 + $0x668] sm:$0x1] }
  0x60   : > { %364 = vst [vmem:[#allocation2 + $0x67] sm:$0x1] %v363_v39  ;;  %368 = vst [vmem:[#allocation2 + $0x69] sm:$0x1] %v367_v41  ;;  %v373_v44 = vld [vmem:[%s4179_s7 + $0x688] sm:$0x1] }
  0x61   : > { %370 = vst [vmem:[#allocation2 + $0x6a] sm:$0x1] %v369_v42  ;;  %372 = vst [vmem:[#allocation2 + $0x6b] sm:$0x1] %v371_v43  ;;  %v375_v45 = vld [vmem:[%s4179_s7 + $0x6a8] sm:$0x1] }
  0x62   : > { %v377_v46 = vld [vmem:[%s4179_s7 + $0x6c8] sm:$0x1]  ;;  %374 = vst [vmem:[#allocation2 + $0x6c] sm:$0x1] %v373_v44  ;;  %376 = vst [vmem:[#allocation2 + $0x6d] sm:$0x1] %v375_v45 }
  0x63   : > { %378 = vst [vmem:[#allocation2 + $0x6e] sm:$0x1] %v377_v46  ;;  %v379_v47 = vld [vmem:[%s4179_s7 + $0x6e8] sm:$0x1]  ;;  %v381_v48 = vld [vmem:[%s4179_s7 + $0x700] sm:$0x1] }
  0x64   : > { %v383_v49 = vld [vmem:[%s4179_s7 + $0x720] sm:$0x1]  ;;  %380 = vst [vmem:[#allocation2 + $0x6f] sm:$0x1] %v379_v47  ;;  %382 = vst [vmem:[#allocation2 + $0x70] sm:$0x1] %v381_v48 }
  0x65   : > { %384 = vst [vmem:[#allocation2 + $0x71] sm:$0x1] %v383_v49  ;;  %v385_v50 = vld [vmem:[%s4179_s7 + $0x740] sm:$0x1]  ;;  %v397_v56 = vld [vmem:[%s4179_s7 + $0x708] sm:$0x1] }
  0x66   : > { %v387_v51 = vld [vmem:[%s4179_s7 + $0x760] sm:$0x1]  ;;  %386 = vst [vmem:[#allocation2 + $0x72] sm:$0x1] %v385_v50  ;;  %v399_v57 = vld [vmem:[%s4179_s7 + $0x728] sm:$0x1] }
  0x67   : > { %v389_v52 = vld [vmem:[%s4179_s7 + $0x780] sm:$0x1]  ;;  %388 = vst [vmem:[#allocation2 + $0x73] sm:$0x1] %v387_v51  ;;  %v401_v58 = vld [vmem:[%s4179_s7 + $0x748] sm:$0x1] }
  0x68   : > { %390 = vst [vmem:[#allocation2 + $0x74] sm:$0x1] %v389_v52  ;;  %v391_v53 = vld [vmem:[%s4179_s7 + $0x7a0] sm:$0x1]  ;;  %398 = vst [vmem:[#allocation2 + $0x78] sm:$0x1] %v397_v56 }
  0x69   : > { %v393_v54 = vld [vmem:[%s4179_s7 + $0x7c0] sm:$0x1]  ;;  %392 = vst [vmem:[#allocation2 + $0x75] sm:$0x1] %v391_v53  ;;  %400 = vst [vmem:[#allocation2 + $0x79] sm:$0x1] %v399_v57 }
  0x6a   : > { %v395_v55 = vld [vmem:[%s4179_s7 + $0x7e0] sm:$0x1]  ;;  %394 = vst [vmem:[#allocation2 + $0x76] sm:$0x1] %v393_v54  ;;  %402 = vst [vmem:[#allocation2 + $0x7a] sm:$0x1] %v401_v58 }
  0x6b   : > { %396 = vst [vmem:[#allocation2 + $0x77] sm:$0x1] %v395_v55  ;;  %v403_v59 = vld [vmem:[%s4179_s7 + $0x768] sm:$0x1]  ;;  %v413_v0 = vld [vmem:[%s4179_s7 + $0x800] sm:$0x1] }
  0x6c   : > { %v405_v60 = vld [vmem:[%s4179_s7 + $0x788] sm:$0x1]  ;;  %404 = vst [vmem:[#allocation2 + $0x7b] sm:$0x1] %v403_v59  ;;  %414 = vst [vmem:[#allocation2 + $0x80] sm:$0x1] %v413_v0 }
  0x6d   : > { %v407_v61 = vld [vmem:[%s4179_s7 + $0x7a8] sm:$0x1]  ;;  %406 = vst [vmem:[#allocation2 + $0x7c] sm:$0x1] %v405_v60  ;;  %v415_v1 = vld [vmem:[%s4179_s7 + $0x820] sm:$0x1] }
  0x6e   : > { %408 = vst [vmem:[#allocation2 + $0x7d] sm:$0x1] %v407_v61  ;;  %v409_v62 = vld [vmem:[%s4179_s7 + $0x7c8] sm:$0x1]  ;;  %v417_v2 = vld [vmem:[%s4179_s7 + $0x840] sm:$0x1] }
  0x6f   : > { %v411_v63 = vld [vmem:[%s4179_s7 + $0x7e8] sm:$0x1]  ;;  %410 = vst [vmem:[#allocation2 + $0x7e] sm:$0x1] %v409_v62  ;;  %v419_v3 = vld [vmem:[%s4179_s7 + $0x860] sm:$0x1] }
  0x70   : > { %412 = vst [vmem:[#allocation2 + $0x7f] sm:$0x1] %v411_v63  ;;  %416 = vst [vmem:[#allocation2 + $0x81] sm:$0x1] %v415_v1  ;;  %v421_v4 = vld [vmem:[%s4179_s7 + $0x880] sm:$0x1] }
  0x71   : > { %418 = vst [vmem:[#allocation2 + $0x82] sm:$0x1] %v417_v2  ;;  %420 = vst [vmem:[#allocation2 + $0x83] sm:$0x1] %v419_v3  ;;  %v423_v5 = vld [vmem:[%s4179_s7 + $0x8a0] sm:$0x1] }
  0x72   : > { %v425_v6 = vld [vmem:[%s4179_s7 + $0x8c0] sm:$0x1]  ;;  %422 = vst [vmem:[#allocation2 + $0x84] sm:$0x1] %v421_v4  ;;  %424 = vst [vmem:[#allocation2 + $0x85] sm:$0x1] %v423_v5 }
  0x73   : > { %426 = vst [vmem:[#allocation2 + $0x86] sm:$0x1] %v425_v6  ;;  %v427_v7 = vld [vmem:[%s4179_s7 + $0x8e0] sm:$0x1]  ;;  %v429_v8 = vld [vmem:[%s4179_s7 + $0x808] sm:$0x1] }
  0x74   : > { %v431_v9 = vld [vmem:[%s4179_s7 + $0x828] sm:$0x1]  ;;  %428 = vst [vmem:[#allocation2 + $0x87] sm:$0x1] %v427_v7  ;;  %430 = vst [vmem:[#allocation2 + $0x88] sm:$0x1] %v429_v8 }
  0x75   : > { %432 = vst [vmem:[#allocation2 + $0x89] sm:$0x1] %v431_v9  ;;  %v433_v10 = vld [vmem:[%s4179_s7 + $0x848] sm:$0x1] }
  0x76   : > { %v435_v11 = vld [vmem:[%s4179_s7 + $0x868] sm:$0x1]  ;;  %434 = vst [vmem:[#allocation2 + $0x8a] sm:$0x1] %v433_v10 }
  0x77   : > { %v437_v12 = vld [vmem:[%s4179_s7 + $0x888] sm:$0x1]  ;;  %436 = vst [vmem:[#allocation2 + $0x8b] sm:$0x1] %v435_v11 }
  0x78   : > { %438 = vst [vmem:[#allocation2 + $0x8c] sm:$0x1] %v437_v12  ;;  %v439_v13 = vld [vmem:[%s4179_s7 + $0x8a8] sm:$0x1] }
  0x79   : > { %v441_v14 = vld [vmem:[%s4179_s7 + $0x8c8] sm:$0x1]  ;;  %440 = vst [vmem:[#allocation2 + $0x8d] sm:$0x1] %v439_v13 }
  0x7a   : > { %v443_v15 = vld [vmem:[%s4179_s7 + $0x8e8] sm:$0x1]  ;;  %442 = vst [vmem:[#allocation2 + $0x8e] sm:$0x1] %v441_v14 }
  0x7b   : > { %444 = vst [vmem:[#allocation2 + $0x8f] sm:$0x1] %v443_v15 }
  0x7c   : > { %763 = vsyncadd [#allocation3], 2304  ;;  %v3420_v16 = vld [vmem:[%s4179_s7 + $0x1] sm:$0x1]  ;;  %v3428_v24 = vld [vmem:[%s4179_s7 + $0x9] sm:$0x1] }
  0x7d   : > { %v3421_v17 = vld [vmem:[%s4179_s7 + $0x21] sm:$0x1]  ;;  %786 = vst [vmem:[#allocation2 + $0x90] sm:$0x1] %v3420_v16  ;;  %v3429_v25 = vld [vmem:[%s4179_s7 + $0x29] sm:$0x1] }
  0x7e   : > { %788 = vst [vmem:[#allocation2 + $0x91] sm:$0x1] %v3421_v17  ;;  %v3422_v18 = vld [vmem:[%s4179_s7 + $0x41] sm:$0x1]  ;;  %v3430_v26 = vld [vmem:[%s4179_s7 + $0x49] sm:$0x1] }
  0x7f   : > { %v3423_v19 = vld [vmem:[%s4179_s7 + $0x61] sm:$0x1]  ;;  %790 = vst [vmem:[#allocation2 + $0x92] sm:$0x1] %v3422_v18  ;;  %802 = vst [vmem:[#allocation2 + $0x98] sm:$0x1] %v3428_v24 }
  0x80   : > { %v3424_v20 = vld [vmem:[%s4179_s7 + $0x81] sm:$0x1]  ;;  %792 = vst [vmem:[#allocation2 + $0x93] sm:$0x1] %v3423_v19  ;;  %804 = vst [vmem:[#allocation2 + $0x99] sm:$0x1] %v3429_v25 }
  0x81   : > { %794 = vst [vmem:[#allocation2 + $0x94] sm:$0x1] %v3424_v20  ;;  %v3425_v21 = vld [vmem:[%s4179_s7 + $0xa1] sm:$0x1]  ;;  %806 = vst [vmem:[#allocation2 + $0x9a] sm:$0x1] %v3430_v26 }
  0x82   : > { %v3426_v22 = vld [vmem:[%s4179_s7 + $0xc1] sm:$0x1]  ;;  %796 = vst [vmem:[#allocation2 + $0x95] sm:$0x1] %v3425_v21  ;;  %v3431_v27 = vld [vmem:[%s4179_s7 + $0x69] sm:$0x1] }
  0x83   : > { %v3427_v23 = vld [vmem:[%s4179_s7 + $0xe1] sm:$0x1]  ;;  %798 = vst [vmem:[#allocation2 + $0x96] sm:$0x1] %v3426_v22  ;;  %v3432_v28 = vld [vmem:[%s4179_s7 + $0x89] sm:$0x1] }
  0x84   : > { %800 = vst [vmem:[#allocation2 + $0x97] sm:$0x1] %v3427_v23  ;;  %v3433_v29 = vld [vmem:[%s4179_s7 + $0xa9] sm:$0x1]  ;;  %808 = vst [vmem:[#allocation2 + $0x9b] sm:$0x1] %v3431_v27 }
  0x85   : > { %810 = vst [vmem:[#allocation2 + $0x9c] sm:$0x1] %v3432_v28  ;;  %812 = vst [vmem:[#allocation2 + $0x9d] sm:$0x1] %v3433_v29  ;;  %v3434_v30 = vld [vmem:[%s4179_s7 + $0xc9] sm:$0x1] }
  0x86   : > { %v3435_v31 = vld [vmem:[%s4179_s7 + $0xe9] sm:$0x1]  ;;  %v3436_v32 = vld [vmem:[%s4179_s7 + $0x101] sm:$0x1]  ;;  %814 = vst [vmem:[#allocation2 + $0x9e] sm:$0x1] %v3434_v30 }
  0x87   : > { %816 = vst [vmem:[#allocation2 + $0x9f] sm:$0x1] %v3435_v31  ;;  %818 = vst [vmem:[#allocation2 + $0xa0] sm:$0x1] %v3436_v32  ;;  %v3437_v33 = vld [vmem:[%s4179_s7 + $0x121] sm:$0x1] }
  0x88   : > { %v3438_v34 = vld [vmem:[%s4179_s7 + $0x141] sm:$0x1]  ;;  %820 = vst [vmem:[#allocation2 + $0xa1] sm:$0x1] %v3437_v33  ;;  %v3444_v40 = vld [vmem:[%s4179_s7 + $0x109] sm:$0x1] }
  0x89   : > { %v3439_v35 = vld [vmem:[%s4179_s7 + $0x161] sm:$0x1]  ;;  %822 = vst [vmem:[#allocation2 + $0xa2] sm:$0x1] %v3438_v34  ;;  %v3445_v41 = vld [vmem:[%s4179_s7 + $0x129] sm:$0x1] }
  0x8a   : > { %824 = vst [vmem:[#allocation2 + $0xa3] sm:$0x1] %v3439_v35  ;;  %v3440_v36 = vld [vmem:[%s4179_s7 + $0x181] sm:$0x1]  ;;  %834 = vst [vmem:[#allocation2 + $0xa8] sm:$0x1] %v3444_v40 }
  0x8b   : > { %v3441_v37 = vld [vmem:[%s4179_s7 + $0x1a1] sm:$0x1]  ;;  %826 = vst [vmem:[#allocation2 + $0xa4] sm:$0x1] %v3440_v36  ;;  %836 = vst [vmem:[#allocation2 + $0xa9] sm:$0x1] %v3445_v41 }
  0x8c   : > { %v3442_v38 = vld [vmem:[%s4179_s7 + $0x1c1] sm:$0x1]  ;;  %828 = vst [vmem:[#allocation2 + $0xa5] sm:$0x1] %v3441_v37  ;;  %v3446_v42 = vld [vmem:[%s4179_s7 + $0x149] sm:$0x1] }
  0x8d   : > { %830 = vst [vmem:[#allocation2 + $0xa6] sm:$0x1] %v3442_v38  ;;  %v3443_v39 = vld [vmem:[%s4179_s7 + $0x1e1] sm:$0x1]  ;;  %v3447_v43 = vld [vmem:[%s4179_s7 + $0x169] sm:$0x1] }
  0x8e   : > { %832 = vst [vmem:[#allocation2 + $0xa7] sm:$0x1] %v3443_v39  ;;  %v3448_v44 = vld [vmem:[%s4179_s7 + $0x189] sm:$0x1]  ;;  %838 = vst [vmem:[#allocation2 + $0xaa] sm:$0x1] %v3446_v42 }
  0x8f   : > { %840 = vst [vmem:[#allocation2 + $0xab] sm:$0x1] %v3447_v43  ;;  %842 = vst [vmem:[#allocation2 + $0xac] sm:$0x1] %v3448_v44  ;;  %v3449_v45 = vld [vmem:[%s4179_s7 + $0x1a9] sm:$0x1] }
  0x90   : > { %v3450_v46 = vld [vmem:[%s4179_s7 + $0x1c9] sm:$0x1]  ;;  %844 = vst [vmem:[#allocation2 + $0xad] sm:$0x1] %v3449_v45  ;;  %v3452_v48 = vld [vmem:[%s4179_s7 + $0x201] sm:$0x1] }
  0x91   : > { %v3451_v47 = vld [vmem:[%s4179_s7 + $0x1e9] sm:$0x1]  ;;  %846 = vst [vmem:[#allocation2 + $0xae] sm:$0x1] %v3450_v46  ;;  %v3453_v49 = vld [vmem:[%s4179_s7 + $0x221] sm:$0x1] }
  0x92   : > { %848 = vst [vmem:[#allocation2 + $0xaf] sm:$0x1] %v3451_v47  ;;  %v3454_v50 = vld [vmem:[%s4179_s7 + $0x241] sm:$0x1]  ;;  %850 = vst [vmem:[#allocation2 + $0xb0] sm:$0x1] %v3452_v48 }
  0x93   : > { %852 = vst [vmem:[#allocation2 + $0xb1] sm:$0x1] %v3453_v49  ;;  %854 = vst [vmem:[#allocation2 + $0xb2] sm:$0x1] %v3454_v50  ;;  %v3455_v51 = vld [vmem:[%s4179_s7 + $0x261] sm:$0x1] }
  0x94   : > { %v3456_v52 = vld [vmem:[%s4179_s7 + $0x281] sm:$0x1]  ;;  %856 = vst [vmem:[#allocation2 + $0xb3] sm:$0x1] %v3455_v51  ;;  %v3460_v56 = vld [vmem:[%s4179_s7 + $0x209] sm:$0x1] }
  0x95   : > { %v3457_v53 = vld [vmem:[%s4179_s7 + $0x2a1] sm:$0x1]  ;;  %858 = vst [vmem:[#allocation2 + $0xb4] sm:$0x1] %v3456_v52  ;;  %866 = vst [vmem:[#allocation2 + $0xb8] sm:$0x1] %v3460_v56 }
  0x96   : > { %860 = vst [vmem:[#allocation2 + $0xb5] sm:$0x1] %v3457_v53  ;;  %v3458_v54 = vld [vmem:[%s4179_s7 + $0x2c1] sm:$0x1]  ;;  %v3461_v57 = vld [vmem:[%s4179_s7 + $0x229] sm:$0x1] }
  0x97   : > { %v3459_v55 = vld [vmem:[%s4179_s7 + $0x2e1] sm:$0x1]  ;;  %862 = vst [vmem:[#allocation2 + $0xb6] sm:$0x1] %v3458_v54  ;;  %v3462_v58 = vld [vmem:[%s4179_s7 + $0x249] sm:$0x1] }
  0x98   : > { %864 = vst [vmem:[#allocation2 + $0xb7] sm:$0x1] %v3459_v55  ;;  %v3463_v59 = vld [vmem:[%s4179_s7 + $0x269] sm:$0x1]  ;;  %868 = vst [vmem:[#allocation2 + $0xb9] sm:$0x1] %v3461_v57 }
  0x99   : > { %870 = vst [vmem:[#allocation2 + $0xba] sm:$0x1] %v3462_v58  ;;  %872 = vst [vmem:[#allocation2 + $0xbb] sm:$0x1] %v3463_v59  ;;  %v3464_v60 = vld [vmem:[%s4179_s7 + $0x289] sm:$0x1] }
  0x9a   : > { %v3465_v61 = vld [vmem:[%s4179_s7 + $0x2a9] sm:$0x1]  ;;  %874 = vst [vmem:[#allocation2 + $0xbc] sm:$0x1] %v3464_v60  ;;  %v3468_v0 = vld [vmem:[%s4179_s7 + $0x301] sm:$0x1] }
  0x9b   : > { %v3466_v62 = vld [vmem:[%s4179_s7 + $0x2c9] sm:$0x1]  ;;  %876 = vst [vmem:[#allocation2 + $0xbd] sm:$0x1] %v3465_v61  ;;  %v3469_v1 = vld [vmem:[%s4179_s7 + $0x321] sm:$0x1] }
  0x9c   : > { %878 = vst [vmem:[#allocation2 + $0xbe] sm:$0x1] %v3466_v62  ;;  %v3467_v63 = vld [vmem:[%s4179_s7 + $0x2e9] sm:$0x1]  ;;  %882 = vst [vmem:[#allocation2 + $0xc0] sm:$0x1] %v3468_v0 }
  0x9d   : > { %880 = vst [vmem:[#allocation2 + $0xbf] sm:$0x1] %v3467_v63  ;;  %884 = vst [vmem:[#allocation2 + $0xc1] sm:$0x1] %v3469_v1  ;;  %v3470_v2 = vld [vmem:[%s4179_s7 + $0x341] sm:$0x1] }
  0x9e   : > { %v3471_v3 = vld [vmem:[%s4179_s7 + $0x361] sm:$0x1]  ;;  %886 = vst [vmem:[#allocation2 + $0xc2] sm:$0x1] %v3470_v2  ;;  %v3476_v8 = vld [vmem:[%s4179_s7 + $0x309] sm:$0x1] }
  0x9f   : > { %v3472_v4 = vld [vmem:[%s4179_s7 + $0x381] sm:$0x1]  ;;  %888 = vst [vmem:[#allocation2 + $0xc3] sm:$0x1] %v3471_v3  ;;  %v3477_v9 = vld [vmem:[%s4179_s7 + $0x329] sm:$0x1] }
  0xa0   : > { %890 = vst [vmem:[#allocation2 + $0xc4] sm:$0x1] %v3472_v4  ;;  %v3473_v5 = vld [vmem:[%s4179_s7 + $0x3a1] sm:$0x1]  ;;  %v3478_v10 = vld [vmem:[%s4179_s7 + $0x349] sm:$0x1] }
  0xa1   : > { %v3474_v6 = vld [vmem:[%s4179_s7 + $0x3c1] sm:$0x1]  ;;  %892 = vst [vmem:[#allocation2 + $0xc5] sm:$0x1] %v3473_v5  ;;  %898 = vst [vmem:[#allocation2 + $0xc8] sm:$0x1] %v3476_v8 }
  0xa2   : > { %v3475_v7 = vld [vmem:[%s4179_s7 + $0x3e1] sm:$0x1]  ;;  %894 = vst [vmem:[#allocation2 + $0xc6] sm:$0x1] %v3474_v6  ;;  %900 = vst [vmem:[#allocation2 + $0xc9] sm:$0x1] %v3477_v9 }
  0xa3   : > { %896 = vst [vmem:[#allocation2 + $0xc7] sm:$0x1] %v3475_v7  ;;  %902 = vst [vmem:[#allocation2 + $0xca] sm:$0x1] %v3478_v10  ;;  %v3479_v11 = vld [vmem:[%s4179_s7 + $0x369] sm:$0x1] }
  0xa4   : > { %v3480_v12 = vld [vmem:[%s4179_s7 + $0x389] sm:$0x1]  ;;  %904 = vst [vmem:[#allocation2 + $0xcb] sm:$0x1] %v3479_v11  ;;  %v3484_v16 = vld [vmem:[%s4179_s7 + $0x401] sm:$0x1] }
  0xa5   : > { %v3481_v13 = vld [vmem:[%s4179_s7 + $0x3a9] sm:$0x1]  ;;  %906 = vst [vmem:[#allocation2 + $0xcc] sm:$0x1] %v3480_v12  ;;  %914 = vst [vmem:[#allocation2 + $0xd0] sm:$0x1] %v3484_v16 }
  0xa6   : > { %908 = vst [vmem:[#allocation2 + $0xcd] sm:$0x1] %v3481_v13  ;;  %v3482_v14 = vld [vmem:[%s4179_s7 + $0x3c9] sm:$0x1]  ;;  %v3485_v17 = vld [vmem:[%s4179_s7 + $0x421] sm:$0x1] }
  0xa7   : > { %v3483_v15 = vld [vmem:[%s4179_s7 + $0x3e9] sm:$0x1]  ;;  %910 = vst [vmem:[#allocation2 + $0xce] sm:$0x1] %v3482_v14  ;;  %v3486_v18 = vld [vmem:[%s4179_s7 + $0x441] sm:$0x1] }
  0xa8   : > { %912 = vst [vmem:[#allocation2 + $0xcf] sm:$0x1] %v3483_v15  ;;  %v3487_v19 = vld [vmem:[%s4179_s7 + $0x461] sm:$0x1]  ;;  %916 = vst [vmem:[#allocation2 + $0xd1] sm:$0x1] %v3485_v17 }
  0xa9   : > { %918 = vst [vmem:[#allocation2 + $0xd2] sm:$0x1] %v3486_v18  ;;  %920 = vst [vmem:[#allocation2 + $0xd3] sm:$0x1] %v3487_v19  ;;  %v3488_v20 = vld [vmem:[%s4179_s7 + $0x481] sm:$0x1] }
  0xaa   : > { %v3489_v21 = vld [vmem:[%s4179_s7 + $0x4a1] sm:$0x1]  ;;  %922 = vst [vmem:[#allocation2 + $0xd4] sm:$0x1] %v3488_v20  ;;  %v3492_v24 = vld [vmem:[%s4179_s7 + $0x409] sm:$0x1] }
  0xab   : > { %v3490_v22 = vld [vmem:[%s4179_s7 + $0x4c1] sm:$0x1]  ;;  %924 = vst [vmem:[#allocation2 + $0xd5] sm:$0x1] %v3489_v21  ;;  %v3493_v25 = vld [vmem:[%s4179_s7 + $0x429] sm:$0x1] }
  0xac   : > { %926 = vst [vmem:[#allocation2 + $0xd6] sm:$0x1] %v3490_v22  ;;  %v3491_v23 = vld [vmem:[%s4179_s7 + $0x4e1] sm:$0x1]  ;;  %930 = vst [vmem:[#allocation2 + $0xd8] sm:$0x1] %v3492_v24 }
  0xad   : > { %928 = vst [vmem:[#allocation2 + $0xd7] sm:$0x1] %v3491_v23  ;;  %932 = vst [vmem:[#allocation2 + $0xd9] sm:$0x1] %v3493_v25  ;;  %v3494_v26 = vld [vmem:[%s4179_s7 + $0x449] sm:$0x1] }
  0xae   : > { %v3495_v27 = vld [vmem:[%s4179_s7 + $0x469] sm:$0x1]  ;;  %934 = vst [vmem:[#allocation2 + $0xda] sm:$0x1] %v3494_v26  ;;  %v3500_v32 = vld [vmem:[%s4179_s7 + $0x501] sm:$0x1] }
  0xaf   : > { %v3496_v28 = vld [vmem:[%s4179_s7 + $0x489] sm:$0x1]  ;;  %936 = vst [vmem:[#allocation2 + $0xdb] sm:$0x1] %v3495_v27  ;;  %v3501_v33 = vld [vmem:[%s4179_s7 + $0x521] sm:$0x1] }
  0xb0   : > { %938 = vst [vmem:[#allocation2 + $0xdc] sm:$0x1] %v3496_v28  ;;  %v3497_v29 = vld [vmem:[%s4179_s7 + $0x4a9] sm:$0x1]  ;;  %v3502_v34 = vld [vmem:[%s4179_s7 + $0x541] sm:$0x1] }
  0xb1   : > { %v3498_v30 = vld [vmem:[%s4179_s7 + $0x4c9] sm:$0x1]  ;;  %940 = vst [vmem:[#allocation2 + $0xdd] sm:$0x1] %v3497_v29  ;;  %946 = vst [vmem:[#allocation2 + $0xe0] sm:$0x1] %v3500_v32 }
  0xb2   : > { %v3499_v31 = vld [vmem:[%s4179_s7 + $0x4e9] sm:$0x1]  ;;  %942 = vst [vmem:[#allocation2 + $0xde] sm:$0x1] %v3498_v30  ;;  %948 = vst [vmem:[#allocation2 + $0xe1] sm:$0x1] %v3501_v33 }
  0xb3   : > { %944 = vst [vmem:[#allocation2 + $0xdf] sm:$0x1] %v3499_v31  ;;  %950 = vst [vmem:[#allocation2 + $0xe2] sm:$0x1] %v3502_v34  ;;  %v3503_v35 = vld [vmem:[%s4179_s7 + $0x561] sm:$0x1] }
  0xb4   : > { %v3504_v36 = vld [vmem:[%s4179_s7 + $0x581] sm:$0x1]  ;;  %952 = vst [vmem:[#allocation2 + $0xe3] sm:$0x1] %v3503_v35  ;;  %v3508_v40 = vld [vmem:[%s4179_s7 + $0x509] sm:$0x1] }
  0xb5   : > { %v3505_v37 = vld [vmem:[%s4179_s7 + $0x5a1] sm:$0x1]  ;;  %954 = vst [vmem:[#allocation2 + $0xe4] sm:$0x1] %v3504_v36  ;;  %962 = vst [vmem:[#allocation2 + $0xe8] sm:$0x1] %v3508_v40 }
  0xb6   : > { %956 = vst [vmem:[#allocation2 + $0xe5] sm:$0x1] %v3505_v37  ;;  %v3506_v38 = vld [vmem:[%s4179_s7 + $0x5c1] sm:$0x1]  ;;  %v3509_v41 = vld [vmem:[%s4179_s7 + $0x529] sm:$0x1] }
  0xb7   : > { %v3507_v39 = vld [vmem:[%s4179_s7 + $0x5e1] sm:$0x1]  ;;  %958 = vst [vmem:[#allocation2 + $0xe6] sm:$0x1] %v3506_v38  ;;  %v3510_v42 = vld [vmem:[%s4179_s7 + $0x549] sm:$0x1] }
  0xb8   : > { %960 = vst [vmem:[#allocation2 + $0xe7] sm:$0x1] %v3507_v39  ;;  %v3511_v43 = vld [vmem:[%s4179_s7 + $0x569] sm:$0x1]  ;;  %964 = vst [vmem:[#allocation2 + $0xe9] sm:$0x1] %v3509_v41 }
  0xb9   : > { %966 = vst [vmem:[#allocation2 + $0xea] sm:$0x1] %v3510_v42  ;;  %968 = vst [vmem:[#allocation2 + $0xeb] sm:$0x1] %v3511_v43  ;;  %v3512_v44 = vld [vmem:[%s4179_s7 + $0x589] sm:$0x1] }
  0xba   : > { %v3513_v45 = vld [vmem:[%s4179_s7 + $0x5a9] sm:$0x1]  ;;  %970 = vst [vmem:[#allocation2 + $0xec] sm:$0x1] %v3512_v44  ;;  %v3516_v48 = vld [vmem:[%s4179_s7 + $0x601] sm:$0x1] }
  0xbb   : > { %v3514_v46 = vld [vmem:[%s4179_s7 + $0x5c9] sm:$0x1]  ;;  %972 = vst [vmem:[#allocation2 + $0xed] sm:$0x1] %v3513_v45  ;;  %v3517_v49 = vld [vmem:[%s4179_s7 + $0x621] sm:$0x1] }
  0xbc   : > { %974 = vst [vmem:[#allocation2 + $0xee] sm:$0x1] %v3514_v46  ;;  %v3515_v47 = vld [vmem:[%s4179_s7 + $0x5e9] sm:$0x1]  ;;  %978 = vst [vmem:[#allocation2 + $0xf0] sm:$0x1] %v3516_v48 }
  0xbd   : > { %976 = vst [vmem:[#allocation2 + $0xef] sm:$0x1] %v3515_v47  ;;  %980 = vst [vmem:[#allocation2 + $0xf1] sm:$0x1] %v3517_v49  ;;  %v3518_v50 = vld [vmem:[%s4179_s7 + $0x641] sm:$0x1] }
  0xbe   : > { %v3519_v51 = vld [vmem:[%s4179_s7 + $0x661] sm:$0x1]  ;;  %982 = vst [vmem:[#allocation2 + $0xf2] sm:$0x1] %v3518_v50  ;;  %v3524_v56 = vld [vmem:[%s4179_s7 + $0x609] sm:$0x1] }
  0xbf   : > { %v3520_v52 = vld [vmem:[%s4179_s7 + $0x681] sm:$0x1]  ;;  %984 = vst [vmem:[#allocation2 + $0xf3] sm:$0x1] %v3519_v51  ;;  %v3525_v57 = vld [vmem:[%s4179_s7 + $0x629] sm:$0x1] }
  0xc0   : > { %986 = vst [vmem:[#allocation2 + $0xf4] sm:$0x1] %v3520_v52  ;;  %v3521_v53 = vld [vmem:[%s4179_s7 + $0x6a1] sm:$0x1]  ;;  %v3526_v58 = vld [vmem:[%s4179_s7 + $0x649] sm:$0x1] }
  0xc1   : > { %v3522_v54 = vld [vmem:[%s4179_s7 + $0x6c1] sm:$0x1]  ;;  %988 = vst [vmem:[#allocation2 + $0xf5] sm:$0x1] %v3521_v53  ;;  %994 = vst [vmem:[#allocation2 + $0xf8] sm:$0x1] %v3524_v56 }
  0xc2   : > { %v3523_v55 = vld [vmem:[%s4179_s7 + $0x6e1] sm:$0x1]  ;;  %990 = vst [vmem:[#allocation2 + $0xf6] sm:$0x1] %v3522_v54  ;;  %996 = vst [vmem:[#allocation2 + $0xf9] sm:$0x1] %v3525_v57 }
  0xc3   : > { %992 = vst [vmem:[#allocation2 + $0xf7] sm:$0x1] %v3523_v55  ;;  %998 = vst [vmem:[#allocation2 + $0xfa] sm:$0x1] %v3526_v58  ;;  %v3527_v59 = vld [vmem:[%s4179_s7 + $0x669] sm:$0x1] }
  0xc4   : > { %v3528_v60 = vld [vmem:[%s4179_s7 + $0x689] sm:$0x1]  ;;  %1000 = vst [vmem:[#allocation2 + $0xfb] sm:$0x1] %v3527_v59  ;;  %v3532_v0 = vld [vmem:[%s4179_s7 + $0x701] sm:$0x1] }
  0xc5   : > { %v3529_v61 = vld [vmem:[%s4179_s7 + $0x6a9] sm:$0x1]  ;;  %1002 = vst [vmem:[#allocation2 + $0xfc] sm:$0x1] %v3528_v60  ;;  %1010 = vst [vmem:[#allocation2 + $0x100] sm:$0x1] %v3532_v0 }
  0xc6   : > { %1004 = vst [vmem:[#allocation2 + $0xfd] sm:$0x1] %v3529_v61  ;;  %v3530_v62 = vld [vmem:[%s4179_s7 + $0x6c9] sm:$0x1]  ;;  %v3533_v1 = vld [vmem:[%s4179_s7 + $0x721] sm:$0x1] }
  0xc7   : > { %v3531_v63 = vld [vmem:[%s4179_s7 + $0x6e9] sm:$0x1]  ;;  %1006 = vst [vmem:[#allocation2 + $0xfe] sm:$0x1] %v3530_v62  ;;  %v3534_v2 = vld [vmem:[%s4179_s7 + $0x741] sm:$0x1] }
  0xc8   : > { %1008 = vst [vmem:[#allocation2 + $0xff] sm:$0x1] %v3531_v63  ;;  %v3535_v3 = vld [vmem:[%s4179_s7 + $0x761] sm:$0x1]  ;;  %1012 = vst [vmem:[#allocation2 + $0x101] sm:$0x1] %v3533_v1 }
  0xc9   : > { %1014 = vst [vmem:[#allocation2 + $0x102] sm:$0x1] %v3534_v2  ;;  %1016 = vst [vmem:[#allocation2 + $0x103] sm:$0x1] %v3535_v3  ;;  %v3536_v4 = vld [vmem:[%s4179_s7 + $0x781] sm:$0x1] }
  0xca   : > { %v3537_v5 = vld [vmem:[%s4179_s7 + $0x7a1] sm:$0x1]  ;;  %1018 = vst [vmem:[#allocation2 + $0x104] sm:$0x1] %v3536_v4  ;;  %v3540_v8 = vld [vmem:[%s4179_s7 + $0x709] sm:$0x1] }
  0xcb   : > { %v3538_v6 = vld [vmem:[%s4179_s7 + $0x7c1] sm:$0x1]  ;;  %1020 = vst [vmem:[#allocation2 + $0x105] sm:$0x1] %v3537_v5  ;;  %v3541_v9 = vld [vmem:[%s4179_s7 + $0x729] sm:$0x1] }
  0xcc   : > { %1022 = vst [vmem:[#allocation2 + $0x106] sm:$0x1] %v3538_v6  ;;  %v3539_v7 = vld [vmem:[%s4179_s7 + $0x7e1] sm:$0x1]  ;;  %1026 = vst [vmem:[#allocation2 + $0x108] sm:$0x1] %v3540_v8 }
  0xcd   : > { %1024 = vst [vmem:[#allocation2 + $0x107] sm:$0x1] %v3539_v7  ;;  %1028 = vst [vmem:[#allocation2 + $0x109] sm:$0x1] %v3541_v9  ;;  %v3542_v10 = vld [vmem:[%s4179_s7 + $0x749] sm:$0x1] }
  0xce   : > { %v3543_v11 = vld [vmem:[%s4179_s7 + $0x769] sm:$0x1]  ;;  %1030 = vst [vmem:[#allocation2 + $0x10a] sm:$0x1] %v3542_v10  ;;  %v3548_v16 = vld [vmem:[%s4179_s7 + $0x801] sm:$0x1] }
  0xcf   : > { %v3544_v12 = vld [vmem:[%s4179_s7 + $0x789] sm:$0x1]  ;;  %1032 = vst [vmem:[#allocation2 + $0x10b] sm:$0x1] %v3543_v11  ;;  %v3549_v17 = vld [vmem:[%s4179_s7 + $0x821] sm:$0x1] }
  0xd0   : > { %1034 = vst [vmem:[#allocation2 + $0x10c] sm:$0x1] %v3544_v12  ;;  %v3545_v13 = vld [vmem:[%s4179_s7 + $0x7a9] sm:$0x1]  ;;  %v3550_v18 = vld [vmem:[%s4179_s7 + $0x841] sm:$0x1] }
  0xd1   : > { %v3546_v14 = vld [vmem:[%s4179_s7 + $0x7c9] sm:$0x1]  ;;  %1036 = vst [vmem:[#allocation2 + $0x10d] sm:$0x1] %v3545_v13  ;;  %1042 = vst [vmem:[#allocation2 + $0x110] sm:$0x1] %v3548_v16 }
  0xd2   : > { %v3547_v15 = vld [vmem:[%s4179_s7 + $0x7e9] sm:$0x1]  ;;  %1038 = vst [vmem:[#allocation2 + $0x10e] sm:$0x1] %v3546_v14  ;;  %1044 = vst [vmem:[#allocation2 + $0x111] sm:$0x1] %v3549_v17 }
  0xd3   : > { %1040 = vst [vmem:[#allocation2 + $0x10f] sm:$0x1] %v3547_v15  ;;  %1046 = vst [vmem:[#allocation2 + $0x112] sm:$0x1] %v3550_v18  ;;  %v3551_v19 = vld [vmem:[%s4179_s7 + $0x861] sm:$0x1] }
  0xd4   : > { %v3552_v20 = vld [vmem:[%s4179_s7 + $0x881] sm:$0x1]  ;;  %1048 = vst [vmem:[#allocation2 + $0x113] sm:$0x1] %v3551_v19  ;;  %v3556_v24 = vld [vmem:[%s4179_s7 + $0x809] sm:$0x1] }
  0xd5   : > { %v3553_v21 = vld [vmem:[%s4179_s7 + $0x8a1] sm:$0x1]  ;;  %1050 = vst [vmem:[#allocation2 + $0x114] sm:$0x1] %v3552_v20  ;;  %1058 = vst [vmem:[#allocation2 + $0x118] sm:$0x1] %v3556_v24 }
  0xd6   : > { %1052 = vst [vmem:[#allocation2 + $0x115] sm:$0x1] %v3553_v21  ;;  %v3554_v22 = vld [vmem:[%s4179_s7 + $0x8c1] sm:$0x1]  ;;  %v3557_v25 = vld [vmem:[%s4179_s7 + $0x829] sm:$0x1] }
  0xd7   : > { %v3555_v23 = vld [vmem:[%s4179_s7 + $0x8e1] sm:$0x1]  ;;  %1054 = vst [vmem:[#allocation2 + $0x116] sm:$0x1] %v3554_v22  ;;  %v3558_v26 = vld [vmem:[%s4179_s7 + $0x849] sm:$0x1] }
  0xd8   : > { %1056 = vst [vmem:[#allocation2 + $0x117] sm:$0x1] %v3555_v23  ;;  %v3559_v27 = vld [vmem:[%s4179_s7 + $0x869] sm:$0x1]  ;;  %1060 = vst [vmem:[#allocation2 + $0x119] sm:$0x1] %v3557_v25 }
  0xd9   : > { %1062 = vst [vmem:[#allocation2 + $0x11a] sm:$0x1] %v3558_v26  ;;  %1064 = vst [vmem:[#allocation2 + $0x11b] sm:$0x1] %v3559_v27  ;;  %v3560_v28 = vld [vmem:[%s4179_s7 + $0x889] sm:$0x1] }
  0xda   : > { %v3561_v29 = vld [vmem:[%s4179_s7 + $0x8a9] sm:$0x1]  ;;  %1066 = vst [vmem:[#allocation2 + $0x11c] sm:$0x1] %v3560_v28 }
  0xdb   : > { %v3562_v30 = vld [vmem:[%s4179_s7 + $0x8c9] sm:$0x1]  ;;  %1068 = vst [vmem:[#allocation2 + $0x11d] sm:$0x1] %v3561_v29 }
  0xdc   : > { %1070 = vst [vmem:[#allocation2 + $0x11e] sm:$0x1] %v3562_v30  ;;  %v3563_v31 = vld [vmem:[%s4179_s7 + $0x8e9] sm:$0x1] }
  0xdd   : > { %1072 = vst [vmem:[#allocation2 + $0x11f] sm:$0x1] %v3563_v31 }
  0xde   : > { %1391 = vsyncadd [#allocation3 + $0x1], 2304  ;;  %v3708_v32 = vld [vmem:[%s4179_s7 + $0x2] sm:$0x1]  ;;  %v3716_v40 = vld [vmem:[%s4179_s7 + $0xa] sm:$0x1] }
  0xdf   : > { %v3709_v33 = vld [vmem:[%s4179_s7 + $0x22] sm:$0x1]  ;;  %1414 = vst [vmem:[#allocation2 + $0x120] sm:$0x1] %v3708_v32  ;;  %v3717_v41 = vld [vmem:[%s4179_s7 + $0x2a] sm:$0x1] }
  0xe0   : > { %1416 = vst [vmem:[#allocation2 + $0x121] sm:$0x1] %v3709_v33  ;;  %v3710_v34 = vld [vmem:[%s4179_s7 + $0x42] sm:$0x1]  ;;  %v3718_v42 = vld [vmem:[%s4179_s7 + $0x4a] sm:$0x1] }
  0xe1   : > { %v3711_v35 = vld [vmem:[%s4179_s7 + $0x62] sm:$0x1]  ;;  %1418 = vst [vmem:[#allocation2 + $0x122] sm:$0x1] %v3710_v34  ;;  %1430 = vst [vmem:[#allocation2 + $0x128] sm:$0x1] %v3716_v40 }
  0xe2   : > { %v3712_v36 = vld [vmem:[%s4179_s7 + $0x82] sm:$0x1]  ;;  %1420 = vst [vmem:[#allocation2 + $0x123] sm:$0x1] %v3711_v35  ;;  %1432 = vst [vmem:[#allocation2 + $0x129] sm:$0x1] %v3717_v41 }
  0xe3   : > { %1422 = vst [vmem:[#allocation2 + $0x124] sm:$0x1] %v3712_v36  ;;  %v3713_v37 = vld [vmem:[%s4179_s7 + $0xa2] sm:$0x1]  ;;  %1434 = vst [vmem:[#allocation2 + $0x12a] sm:$0x1] %v3718_v42 }
  0xe4   : > { %v3714_v38 = vld [vmem:[%s4179_s7 + $0xc2] sm:$0x1]  ;;  %1424 = vst [vmem:[#allocation2 + $0x125] sm:$0x1] %v3713_v37  ;;  %v3719_v43 = vld [vmem:[%s4179_s7 + $0x6a] sm:$0x1] }
  0xe5   : > { %v3715_v39 = vld [vmem:[%s4179_s7 + $0xe2] sm:$0x1]  ;;  %1426 = vst [vmem:[#allocation2 + $0x126] sm:$0x1] %v3714_v38  ;;  %v3720_v44 = vld [vmem:[%s4179_s7 + $0x8a] sm:$0x1] }
  0xe6   : > { %1428 = vst [vmem:[#allocation2 + $0x127] sm:$0x1] %v3715_v39  ;;  %v3721_v45 = vld [vmem:[%s4179_s7 + $0xaa] sm:$0x1]  ;;  %1436 = vst [vmem:[#allocation2 + $0x12b] sm:$0x1] %v3719_v43 }
  0xe7   : > { %1438 = vst [vmem:[#allocation2 + $0x12c] sm:$0x1] %v3720_v44  ;;  %1440 = vst [vmem:[#allocation2 + $0x12d] sm:$0x1] %v3721_v45  ;;  %v3722_v46 = vld [vmem:[%s4179_s7 + $0xca] sm:$0x1] }
  0xe8   : > { %v3723_v47 = vld [vmem:[%s4179_s7 + $0xea] sm:$0x1]  ;;  %v3724_v48 = vld [vmem:[%s4179_s7 + $0x102] sm:$0x1]  ;;  %1442 = vst [vmem:[#allocation2 + $0x12e] sm:$0x1] %v3722_v46 }
  0xe9   : > { %1444 = vst [vmem:[#allocation2 + $0x12f] sm:$0x1] %v3723_v47  ;;  %1446 = vst [vmem:[#allocation2 + $0x130] sm:$0x1] %v3724_v48  ;;  %v3725_v49 = vld [vmem:[%s4179_s7 + $0x122] sm:$0x1] }
  0xea   : > { %v3726_v50 = vld [vmem:[%s4179_s7 + $0x142] sm:$0x1]  ;;  %1448 = vst [vmem:[#allocation2 + $0x131] sm:$0x1] %v3725_v49  ;;  %v3732_v56 = vld [vmem:[%s4179_s7 + $0x10a] sm:$0x1] }
  0xeb   : > { %v3727_v51 = vld [vmem:[%s4179_s7 + $0x162] sm:$0x1]  ;;  %1450 = vst [vmem:[#allocation2 + $0x132] sm:$0x1] %v3726_v50  ;;  %v3733_v57 = vld [vmem:[%s4179_s7 + $0x12a] sm:$0x1] }
  0xec   : > { %1452 = vst [vmem:[#allocation2 + $0x133] sm:$0x1] %v3727_v51  ;;  %v3728_v52 = vld [vmem:[%s4179_s7 + $0x182] sm:$0x1]  ;;  %1462 = vst [vmem:[#allocation2 + $0x138] sm:$0x1] %v3732_v56 }
  0xed   : > { %v3729_v53 = vld [vmem:[%s4179_s7 + $0x1a2] sm:$0x1]  ;;  %1454 = vst [vmem:[#allocation2 + $0x134] sm:$0x1] %v3728_v52  ;;  %1464 = vst [vmem:[#allocation2 + $0x139] sm:$0x1] %v3733_v57 }
  0xee   : > { %v3730_v54 = vld [vmem:[%s4179_s7 + $0x1c2] sm:$0x1]  ;;  %1456 = vst [vmem:[#allocation2 + $0x135] sm:$0x1] %v3729_v53  ;;  %v3734_v58 = vld [vmem:[%s4179_s7 + $0x14a] sm:$0x1] }
  0xef   : > { %1458 = vst [vmem:[#allocation2 + $0x136] sm:$0x1] %v3730_v54  ;;  %v3731_v55 = vld [vmem:[%s4179_s7 + $0x1e2] sm:$0x1]  ;;  %v3735_v59 = vld [vmem:[%s4179_s7 + $0x16a] sm:$0x1] }
  0xf0   : > { %1460 = vst [vmem:[#allocation2 + $0x137] sm:$0x1] %v3731_v55  ;;  %v3736_v60 = vld [vmem:[%s4179_s7 + $0x18a] sm:$0x1]  ;;  %1466 = vst [vmem:[#allocation2 + $0x13a] sm:$0x1] %v3734_v58 }
  0xf1   : > { %1468 = vst [vmem:[#allocation2 + $0x13b] sm:$0x1] %v3735_v59  ;;  %1470 = vst [vmem:[#allocation2 + $0x13c] sm:$0x1] %v3736_v60  ;;  %v3737_v61 = vld [vmem:[%s4179_s7 + $0x1aa] sm:$0x1] }
  0xf2   : > { %v3738_v62 = vld [vmem:[%s4179_s7 + $0x1ca] sm:$0x1]  ;;  %1472 = vst [vmem:[#allocation2 + $0x13d] sm:$0x1] %v3737_v61  ;;  %v3740_v0 = vld [vmem:[%s4179_s7 + $0x202] sm:$0x1] }
  0xf3   : > { %v3739_v63 = vld [vmem:[%s4179_s7 + $0x1ea] sm:$0x1]  ;;  %1474 = vst [vmem:[#allocation2 + $0x13e] sm:$0x1] %v3738_v62  ;;  %v3741_v1 = vld [vmem:[%s4179_s7 + $0x222] sm:$0x1] }
  0xf4   : > { %1476 = vst [vmem:[#allocation2 + $0x13f] sm:$0x1] %v3739_v63  ;;  %v3742_v2 = vld [vmem:[%s4179_s7 + $0x242] sm:$0x1]  ;;  %1478 = vst [vmem:[#allocation2 + $0x140] sm:$0x1] %v3740_v0 }
  0xf5   : > { %1480 = vst [vmem:[#allocation2 + $0x141] sm:$0x1] %v3741_v1  ;;  %1482 = vst [vmem:[#allocation2 + $0x142] sm:$0x1] %v3742_v2  ;;  %v3743_v3 = vld [vmem:[%s4179_s7 + $0x262] sm:$0x1] }
  0xf6   : > { %v3744_v4 = vld [vmem:[%s4179_s7 + $0x282] sm:$0x1]  ;;  %1484 = vst [vmem:[#allocation2 + $0x143] sm:$0x1] %v3743_v3  ;;  %v3748_v8 = vld [vmem:[%s4179_s7 + $0x20a] sm:$0x1] }
  0xf7   : > { %v3745_v5 = vld [vmem:[%s4179_s7 + $0x2a2] sm:$0x1]  ;;  %1486 = vst [vmem:[#allocation2 + $0x144] sm:$0x1] %v3744_v4  ;;  %1494 = vst [vmem:[#allocation2 + $0x148] sm:$0x1] %v3748_v8 }
  0xf8   : > { %1488 = vst [vmem:[#allocation2 + $0x145] sm:$0x1] %v3745_v5  ;;  %v3746_v6 = vld [vmem:[%s4179_s7 + $0x2c2] sm:$0x1]  ;;  %v3749_v9 = vld [vmem:[%s4179_s7 + $0x22a] sm:$0x1] }
  0xf9   : > { %v3747_v7 = vld [vmem:[%s4179_s7 + $0x2e2] sm:$0x1]  ;;  %1490 = vst [vmem:[#allocation2 + $0x146] sm:$0x1] %v3746_v6  ;;  %v3750_v10 = vld [vmem:[%s4179_s7 + $0x24a] sm:$0x1] }
  0xfa   : > { %1492 = vst [vmem:[#allocation2 + $0x147] sm:$0x1] %v3747_v7  ;;  %v3751_v11 = vld [vmem:[%s4179_s7 + $0x26a] sm:$0x1]  ;;  %1496 = vst [vmem:[#allocation2 + $0x149] sm:$0x1] %v3749_v9 }
  0xfb   : > { %1498 = vst [vmem:[#allocation2 + $0x14a] sm:$0x1] %v3750_v10  ;;  %1500 = vst [vmem:[#allocation2 + $0x14b] sm:$0x1] %v3751_v11  ;;  %v3752_v12 = vld [vmem:[%s4179_s7 + $0x28a] sm:$0x1] }
  0xfc   : > { %v3753_v13 = vld [vmem:[%s4179_s7 + $0x2aa] sm:$0x1]  ;;  %1502 = vst [vmem:[#allocation2 + $0x14c] sm:$0x1] %v3752_v12  ;;  %v3756_v16 = vld [vmem:[%s4179_s7 + $0x302] sm:$0x1] }
  0xfd   : > { %v3754_v14 = vld [vmem:[%s4179_s7 + $0x2ca] sm:$0x1]  ;;  %1504 = vst [vmem:[#allocation2 + $0x14d] sm:$0x1] %v3753_v13  ;;  %v3757_v17 = vld [vmem:[%s4179_s7 + $0x322] sm:$0x1] }
  0xfe   : > { %1506 = vst [vmem:[#allocation2 + $0x14e] sm:$0x1] %v3754_v14  ;;  %v3755_v15 = vld [vmem:[%s4179_s7 + $0x2ea] sm:$0x1]  ;;  %1510 = vst [vmem:[#allocation2 + $0x150] sm:$0x1] %v3756_v16 }
  0xff   : > { %1508 = vst [vmem:[#allocation2 + $0x14f] sm:$0x1] %v3755_v15  ;;  %1512 = vst [vmem:[#allocation2 + $0x151] sm:$0x1] %v3757_v17  ;;  %v3758_v18 = vld [vmem:[%s4179_s7 + $0x342] sm:$0x1] }
 0x100   : > { %v3759_v19 = vld [vmem:[%s4179_s7 + $0x362] sm:$0x1]  ;;  %1514 = vst [vmem:[#allocation2 + $0x152] sm:$0x1] %v3758_v18  ;;  %v3764_v24 = vld [vmem:[%s4179_s7 + $0x30a] sm:$0x1] }
 0x101   : > { %v3760_v20 = vld [vmem:[%s4179_s7 + $0x382] sm:$0x1]  ;;  %1516 = vst [vmem:[#allocation2 + $0x153] sm:$0x1] %v3759_v19  ;;  %v3765_v25 = vld [vmem:[%s4179_s7 + $0x32a] sm:$0x1] }
 0x102   : > { %1518 = vst [vmem:[#allocation2 + $0x154] sm:$0x1] %v3760_v20  ;;  %v3761_v21 = vld [vmem:[%s4179_s7 + $0x3a2] sm:$0x1]  ;;  %v3766_v26 = vld [vmem:[%s4179_s7 + $0x34a] sm:$0x1] }
 0x103   : > { %v3762_v22 = vld [vmem:[%s4179_s7 + $0x3c2] sm:$0x1]  ;;  %1520 = vst [vmem:[#allocation2 + $0x155] sm:$0x1] %v3761_v21  ;;  %1526 = vst [vmem:[#allocation2 + $0x158] sm:$0x1] %v3764_v24 }
 0x104   : > { %v3763_v23 = vld [vmem:[%s4179_s7 + $0x3e2] sm:$0x1]  ;;  %1522 = vst [vmem:[#allocation2 + $0x156] sm:$0x1] %v3762_v22  ;;  %1528 = vst [vmem:[#allocation2 + $0x159] sm:$0x1] %v3765_v25 }
 0x105   : > { %1524 = vst [vmem:[#allocation2 + $0x157] sm:$0x1] %v3763_v23  ;;  %1530 = vst [vmem:[#allocation2 + $0x15a] sm:$0x1] %v3766_v26  ;;  %v3767_v27 = vld [vmem:[%s4179_s7 + $0x36a] sm:$0x1] }
 0x106   : > { %v3768_v28 = vld [vmem:[%s4179_s7 + $0x38a] sm:$0x1]  ;;  %1532 = vst [vmem:[#allocation2 + $0x15b] sm:$0x1] %v3767_v27  ;;  %v3772_v32 = vld [vmem:[%s4179_s7 + $0x402] sm:$0x1] }
 0x107   : > { %v3769_v29 = vld [vmem:[%s4179_s7 + $0x3aa] sm:$0x1]  ;;  %1534 = vst [vmem:[#allocation2 + $0x15c] sm:$0x1] %v3768_v28  ;;  %1542 = vst [vmem:[#allocation2 + $0x160] sm:$0x1] %v3772_v32 }
 0x108   : > { %1536 = vst [vmem:[#allocation2 + $0x15d] sm:$0x1] %v3769_v29  ;;  %v3770_v30 = vld [vmem:[%s4179_s7 + $0x3ca] sm:$0x1]  ;;  %v3773_v33 = vld [vmem:[%s4179_s7 + $0x422] sm:$0x1] }
 0x109   : > { %v3771_v31 = vld [vmem:[%s4179_s7 + $0x3ea] sm:$0x1]  ;;  %1538 = vst [vmem:[#allocation2 + $0x15e] sm:$0x1] %v3770_v30  ;;  %v3774_v34 = vld [vmem:[%s4179_s7 + $0x442] sm:$0x1] }
 0x10a   : > { %1540 = vst [vmem:[#allocation2 + $0x15f] sm:$0x1] %v3771_v31  ;;  %v3775_v35 = vld [vmem:[%s4179_s7 + $0x462] sm:$0x1]  ;;  %1544 = vst [vmem:[#allocation2 + $0x161] sm:$0x1] %v3773_v33 }
 0x10b   : > { %1546 = vst [vmem:[#allocation2 + $0x162] sm:$0x1] %v3774_v34  ;;  %1548 = vst [vmem:[#allocation2 + $0x163] sm:$0x1] %v3775_v35  ;;  %v3776_v36 = vld [vmem:[%s4179_s7 + $0x482] sm:$0x1] }
 0x10c   : > { %v3777_v37 = vld [vmem:[%s4179_s7 + $0x4a2] sm:$0x1]  ;;  %1550 = vst [vmem:[#allocation2 + $0x164] sm:$0x1] %v3776_v36  ;;  %v3780_v40 = vld [vmem:[%s4179_s7 + $0x40a] sm:$0x1] }
 0x10d   : > { %v3778_v38 = vld [vmem:[%s4179_s7 + $0x4c2] sm:$0x1]  ;;  %1552 = vst [vmem:[#allocation2 + $0x165] sm:$0x1] %v3777_v37  ;;  %v3781_v41 = vld [vmem:[%s4179_s7 + $0x42a] sm:$0x1] }
 0x10e   : > { %1554 = vst [vmem:[#allocation2 + $0x166] sm:$0x1] %v3778_v38  ;;  %v3779_v39 = vld [vmem:[%s4179_s7 + $0x4e2] sm:$0x1]  ;;  %1558 = vst [vmem:[#allocation2 + $0x168] sm:$0x1] %v3780_v40 }
 0x10f   : > { %1556 = vst [vmem:[#allocation2 + $0x167] sm:$0x1] %v3779_v39  ;;  %1560 = vst [vmem:[#allocation2 + $0x169] sm:$0x1] %v3781_v41  ;;  %v3782_v42 = vld [vmem:[%s4179_s7 + $0x44a] sm:$0x1] }
 0x110   : > { %v3783_v43 = vld [vmem:[%s4179_s7 + $0x46a] sm:$0x1]  ;;  %1562 = vst [vmem:[#allocation2 + $0x16a] sm:$0x1] %v3782_v42  ;;  %v3788_v48 = vld [vmem:[%s4179_s7 + $0x502] sm:$0x1] }
 0x111   : > { %v3784_v44 = vld [vmem:[%s4179_s7 + $0x48a] sm:$0x1]  ;;  %1564 = vst [vmem:[#allocation2 + $0x16b] sm:$0x1] %v3783_v43  ;;  %v3789_v49 = vld [vmem:[%s4179_s7 + $0x522] sm:$0x1] }
 0x112   : > { %1566 = vst [vmem:[#allocation2 + $0x16c] sm:$0x1] %v3784_v44  ;;  %v3785_v45 = vld [vmem:[%s4179_s7 + $0x4aa] sm:$0x1]  ;;  %v3790_v50 = vld [vmem:[%s4179_s7 + $0x542] sm:$0x1] }
 0x113   : > { %v3786_v46 = vld [vmem:[%s4179_s7 + $0x4ca] sm:$0x1]  ;;  %1568 = vst [vmem:[#allocation2 + $0x16d] sm:$0x1] %v3785_v45  ;;  %1574 = vst [vmem:[#allocation2 + $0x170] sm:$0x1] %v3788_v48 }
 0x114   : > { %v3787_v47 = vld [vmem:[%s4179_s7 + $0x4ea] sm:$0x1]  ;;  %1570 = vst [vmem:[#allocation2 + $0x16e] sm:$0x1] %v3786_v46  ;;  %1576 = vst [vmem:[#allocation2 + $0x171] sm:$0x1] %v3789_v49 }
 0x115   : > { %1572 = vst [vmem:[#allocation2 + $0x16f] sm:$0x1] %v3787_v47  ;;  %1578 = vst [vmem:[#allocation2 + $0x172] sm:$0x1] %v3790_v50  ;;  %v3791_v51 = vld [vmem:[%s4179_s7 + $0x562] sm:$0x1] }
 0x116   : > { %v3792_v52 = vld [vmem:[%s4179_s7 + $0x582] sm:$0x1]  ;;  %1580 = vst [vmem:[#allocation2 + $0x173] sm:$0x1] %v3791_v51  ;;  %v3796_v56 = vld [vmem:[%s4179_s7 + $0x50a] sm:$0x1] }
 0x117   : > { %v3793_v53 = vld [vmem:[%s4179_s7 + $0x5a2] sm:$0x1]  ;;  %1582 = vst [vmem:[#allocation2 + $0x174] sm:$0x1] %v3792_v52  ;;  %1590 = vst [vmem:[#allocation2 + $0x178] sm:$0x1] %v3796_v56 }
 0x118   : > { %1584 = vst [vmem:[#allocation2 + $0x175] sm:$0x1] %v3793_v53  ;;  %v3794_v54 = vld [vmem:[%s4179_s7 + $0x5c2] sm:$0x1]  ;;  %v3797_v57 = vld [vmem:[%s4179_s7 + $0x52a] sm:$0x1] }
 0x119   : > { %v3795_v55 = vld [vmem:[%s4179_s7 + $0x5e2] sm:$0x1]  ;;  %1586 = vst [vmem:[#allocation2 + $0x176] sm:$0x1] %v3794_v54  ;;  %v3798_v58 = vld [vmem:[%s4179_s7 + $0x54a] sm:$0x1] }
 0x11a   : > { %1588 = vst [vmem:[#allocation2 + $0x177] sm:$0x1] %v3795_v55  ;;  %v3799_v59 = vld [vmem:[%s4179_s7 + $0x56a] sm:$0x1]  ;;  %1592 = vst [vmem:[#allocation2 + $0x179] sm:$0x1] %v3797_v57 }
 0x11b   : > { %1594 = vst [vmem:[#allocation2 + $0x17a] sm:$0x1] %v3798_v58  ;;  %1596 = vst [vmem:[#allocation2 + $0x17b] sm:$0x1] %v3799_v59  ;;  %v3800_v60 = vld [vmem:[%s4179_s7 + $0x58a] sm:$0x1] }
 0x11c   : > { %v3801_v61 = vld [vmem:[%s4179_s7 + $0x5aa] sm:$0x1]  ;;  %1598 = vst [vmem:[#allocation2 + $0x17c] sm:$0x1] %v3800_v60  ;;  %v3804_v0 = vld [vmem:[%s4179_s7 + $0x602] sm:$0x1] }
 0x11d   : > { %v3802_v62 = vld [vmem:[%s4179_s7 + $0x5ca] sm:$0x1]  ;;  %1600 = vst [vmem:[#allocation2 + $0x17d] sm:$0x1] %v3801_v61  ;;  %v3805_v1 = vld [vmem:[%s4179_s7 + $0x622] sm:$0x1] }
 0x11e   : > { %1602 = vst [vmem:[#allocation2 + $0x17e] sm:$0x1] %v3802_v62  ;;  %v3803_v63 = vld [vmem:[%s4179_s7 + $0x5ea] sm:$0x1]  ;;  %1606 = vst [vmem:[#allocation2 + $0x180] sm:$0x1] %v3804_v0 }
 0x11f   : > { %1604 = vst [vmem:[#allocation2 + $0x17f] sm:$0x1] %v3803_v63  ;;  %1608 = vst [vmem:[#allocation2 + $0x181] sm:$0x1] %v3805_v1  ;;  %v3806_v2 = vld [vmem:[%s4179_s7 + $0x642] sm:$0x1] }
 0x120   : > { %v3807_v3 = vld [vmem:[%s4179_s7 + $0x662] sm:$0x1]  ;;  %1610 = vst [vmem:[#allocation2 + $0x182] sm:$0x1] %v3806_v2  ;;  %v3812_v8 = vld [vmem:[%s4179_s7 + $0x60a] sm:$0x1] }
 0x121   : > { %v3808_v4 = vld [vmem:[%s4179_s7 + $0x682] sm:$0x1]  ;;  %1612 = vst [vmem:[#allocation2 + $0x183] sm:$0x1] %v3807_v3  ;;  %v3813_v9 = vld [vmem:[%s4179_s7 + $0x62a] sm:$0x1] }
 0x122   : > { %1614 = vst [vmem:[#allocation2 + $0x184] sm:$0x1] %v3808_v4  ;;  %v3809_v5 = vld [vmem:[%s4179_s7 + $0x6a2] sm:$0x1]  ;;  %v3814_v10 = vld [vmem:[%s4179_s7 + $0x64a] sm:$0x1] }
 0x123   : > { %v3810_v6 = vld [vmem:[%s4179_s7 + $0x6c2] sm:$0x1]  ;;  %1616 = vst [vmem:[#allocation2 + $0x185] sm:$0x1] %v3809_v5  ;;  %1622 = vst [vmem:[#allocation2 + $0x188] sm:$0x1] %v3812_v8 }
 0x124   : > { %v3811_v7 = vld [vmem:[%s4179_s7 + $0x6e2] sm:$0x1]  ;;  %1618 = vst [vmem:[#allocation2 + $0x186] sm:$0x1] %v3810_v6  ;;  %1624 = vst [vmem:[#allocation2 + $0x189] sm:$0x1] %v3813_v9 }
 0x125   : > { %1620 = vst [vmem:[#allocation2 + $0x187] sm:$0x1] %v3811_v7  ;;  %1626 = vst [vmem:[#allocation2 + $0x18a] sm:$0x1] %v3814_v10  ;;  %v3815_v11 = vld [vmem:[%s4179_s7 + $0x66a] sm:$0x1] }
 0x126   : > { %v3816_v12 = vld [vmem:[%s4179_s7 + $0x68a] sm:$0x1]  ;;  %1628 = vst [vmem:[#allocation2 + $0x18b] sm:$0x1] %v3815_v11  ;;  %v3820_v16 = vld [vmem:[%s4179_s7 + $0x702] sm:$0x1] }
 0x127   : > { %v3817_v13 = vld [vmem:[%s4179_s7 + $0x6aa] sm:$0x1]  ;;  %1630 = vst [vmem:[#allocation2 + $0x18c] sm:$0x1] %v3816_v12  ;;  %1638 = vst [vmem:[#allocation2 + $0x190] sm:$0x1] %v3820_v16 }
 0x128   : > { %1632 = vst [vmem:[#allocation2 + $0x18d] sm:$0x1] %v3817_v13  ;;  %v3818_v14 = vld [vmem:[%s4179_s7 + $0x6ca] sm:$0x1]  ;;  %v3821_v17 = vld [vmem:[%s4179_s7 + $0x722] sm:$0x1] }
 0x129   : > { %v3819_v15 = vld [vmem:[%s4179_s7 + $0x6ea] sm:$0x1]  ;;  %1634 = vst [vmem:[#allocation2 + $0x18e] sm:$0x1] %v3818_v14  ;;  %v3822_v18 = vld [vmem:[%s4179_s7 + $0x742] sm:$0x1] }
 0x12a   : > { %1636 = vst [vmem:[#allocation2 + $0x18f] sm:$0x1] %v3819_v15  ;;  %v3823_v19 = vld [vmem:[%s4179_s7 + $0x762] sm:$0x1]  ;;  %1640 = vst [vmem:[#allocation2 + $0x191] sm:$0x1] %v3821_v17 }
 0x12b   : > { %1642 = vst [vmem:[#allocation2 + $0x192] sm:$0x1] %v3822_v18  ;;  %1644 = vst [vmem:[#allocation2 + $0x193] sm:$0x1] %v3823_v19  ;;  %v3824_v20 = vld [vmem:[%s4179_s7 + $0x782] sm:$0x1] }
 0x12c   : > { %v3825_v21 = vld [vmem:[%s4179_s7 + $0x7a2] sm:$0x1]  ;;  %1646 = vst [vmem:[#allocation2 + $0x194] sm:$0x1] %v3824_v20  ;;  %v3828_v24 = vld [vmem:[%s4179_s7 + $0x70a] sm:$0x1] }
 0x12d   : > { %v3826_v22 = vld [vmem:[%s4179_s7 + $0x7c2] sm:$0x1]  ;;  %1648 = vst [vmem:[#allocation2 + $0x195] sm:$0x1] %v3825_v21  ;;  %v3829_v25 = vld [vmem:[%s4179_s7 + $0x72a] sm:$0x1] }
 0x12e   : > { %1650 = vst [vmem:[#allocation2 + $0x196] sm:$0x1] %v3826_v22  ;;  %v3827_v23 = vld [vmem:[%s4179_s7 + $0x7e2] sm:$0x1]  ;;  %1654 = vst [vmem:[#allocation2 + $0x198] sm:$0x1] %v3828_v24 }
 0x12f   : > { %1652 = vst [vmem:[#allocation2 + $0x197] sm:$0x1] %v3827_v23  ;;  %1656 = vst [vmem:[#allocation2 + $0x199] sm:$0x1] %v3829_v25  ;;  %v3830_v26 = vld [vmem:[%s4179_s7 + $0x74a] sm:$0x1] }
 0x130   : > { %v3831_v27 = vld [vmem:[%s4179_s7 + $0x76a] sm:$0x1]  ;;  %1658 = vst [vmem:[#allocation2 + $0x19a] sm:$0x1] %v3830_v26  ;;  %v3836_v32 = vld [vmem:[%s4179_s7 + $0x802] sm:$0x1] }
 0x131   : > { %v3832_v28 = vld [vmem:[%s4179_s7 + $0x78a] sm:$0x1]  ;;  %1660 = vst [vmem:[#allocation2 + $0x19b] sm:$0x1] %v3831_v27  ;;  %v3837_v33 = vld [vmem:[%s4179_s7 + $0x822] sm:$0x1] }
 0x132   : > { %1662 = vst [vmem:[#allocation2 + $0x19c] sm:$0x1] %v3832_v28  ;;  %v3833_v29 = vld [vmem:[%s4179_s7 + $0x7aa] sm:$0x1]  ;;  %v3838_v34 = vld [vmem:[%s4179_s7 + $0x842] sm:$0x1] }
 0x133   : > { %v3834_v30 = vld [vmem:[%s4179_s7 + $0x7ca] sm:$0x1]  ;;  %1664 = vst [vmem:[#allocation2 + $0x19d] sm:$0x1] %v3833_v29  ;;  %1670 = vst [vmem:[#allocation2 + $0x1a0] sm:$0x1] %v3836_v32 }
 0x134   : > { %v3835_v31 = vld [vmem:[%s4179_s7 + $0x7ea] sm:$0x1]  ;;  %1666 = vst [vmem:[#allocation2 + $0x19e] sm:$0x1] %v3834_v30  ;;  %1672 = vst [vmem:[#allocation2 + $0x1a1] sm:$0x1] %v3837_v33 }
 0x135   : > { %1668 = vst [vmem:[#allocation2 + $0x19f] sm:$0x1] %v3835_v31  ;;  %1674 = vst [vmem:[#allocation2 + $0x1a2] sm:$0x1] %v3838_v34  ;;  %v3839_v35 = vld [vmem:[%s4179_s7 + $0x862] sm:$0x1] }
 0x136   : > { %v3840_v36 = vld [vmem:[%s4179_s7 + $0x882] sm:$0x1]  ;;  %1676 = vst [vmem:[#allocation2 + $0x1a3] sm:$0x1] %v3839_v35  ;;  %v3844_v40 = vld [vmem:[%s4179_s7 + $0x80a] sm:$0x1] }
 0x137   : > { %v3841_v37 = vld [vmem:[%s4179_s7 + $0x8a2] sm:$0x1]  ;;  %1678 = vst [vmem:[#allocation2 + $0x1a4] sm:$0x1] %v3840_v36  ;;  %1686 = vst [vmem:[#allocation2 + $0x1a8] sm:$0x1] %v3844_v40 }
 0x138   : > { %1680 = vst [vmem:[#allocation2 + $0x1a5] sm:$0x1] %v3841_v37  ;;  %v3842_v38 = vld [vmem:[%s4179_s7 + $0x8c2] sm:$0x1]  ;;  %v3845_v41 = vld [vmem:[%s4179_s7 + $0x82a] sm:$0x1] }
 0x139   : > { %v3843_v39 = vld [vmem:[%s4179_s7 + $0x8e2] sm:$0x1]  ;;  %1682 = vst [vmem:[#allocation2 + $0x1a6] sm:$0x1] %v3842_v38  ;;  %v3846_v42 = vld [vmem:[%s4179_s7 + $0x84a] sm:$0x1] }
 0x13a   : > { %1684 = vst [vmem:[#allocation2 + $0x1a7] sm:$0x1] %v3843_v39  ;;  %v3847_v43 = vld [vmem:[%s4179_s7 + $0x86a] sm:$0x1]  ;;  %1688 = vst [vmem:[#allocation2 + $0x1a9] sm:$0x1] %v3845_v41 }
 0x13b   : > { %1690 = vst [vmem:[#allocation2 + $0x1aa] sm:$0x1] %v3846_v42  ;;  %1692 = vst [vmem:[#allocation2 + $0x1ab] sm:$0x1] %v3847_v43  ;;  %v3848_v44 = vld [vmem:[%s4179_s7 + $0x88a] sm:$0x1] }
 0x13c   : > { %v3849_v45 = vld [vmem:[%s4179_s7 + $0x8aa] sm:$0x1]  ;;  %1694 = vst [vmem:[#allocation2 + $0x1ac] sm:$0x1] %v3848_v44 }
 0x13d   : > { %v3850_v46 = vld [vmem:[%s4179_s7 + $0x8ca] sm:$0x1]  ;;  %1696 = vst [vmem:[#allocation2 + $0x1ad] sm:$0x1] %v3849_v45 }
 0x13e   : > { %1698 = vst [vmem:[#allocation2 + $0x1ae] sm:$0x1] %v3850_v46  ;;  %v3851_v47 = vld [vmem:[%s4179_s7 + $0x8ea] sm:$0x1] }
 0x13f   : > { %1700 = vst [vmem:[#allocation2 + $0x1af] sm:$0x1] %v3851_v47 }
 0x140   : > { %2019 = vsyncadd [#allocation3 + $0x2], 2304 }
 0x141 PF: > { %s2020_s8 = sadd.s32 3, %s4072_s14 }
 0x142   : > { %p3852_p10 = scmp.ge.s32.totalorder %s2020_s8, 10 }
 0x143   : > { %p2025_p11 = scmp.lt.s32.totalorder (!%p3852_p10), %s2020_s8, 0  ;;  %s2026_s9 = ssub.s32 (!%p3852_p10), 0, %s2020_s8 }
 0x144   : > { %2024 = sbr.rel (%p3852_p10) target bundleno = 432 (0x1b0), region = 147  ;;  %s3853_s10 = smin.u32 (!%p3852_p10), %s2026_s9, %s2020_s8 }
 0x145   : > { %s2037_s11 = sshrl.u32 (!%p3852_p10), %s2020_s8, 3  ;;  %s2028_s12 = sand.u32 (!%p3852_p10), 3, %s3853_s10  }
 0x146   : > { %s2038_s21 = sand.u32 (!%p3852_p10), 7, %s2020_s8   ;;  %s2029_s22 = ssub.s32 (!%p3852_p10), 0, %s2028_s12 }
 0x147   : > { %s3856_s24 = sshll.u32 (!%p3852_p10), %s2037_s11, 4  ;;  %s2041_s26 = smul.u32 (!%p3852_p10), 2304, %s4076_s15 }
 0x148   : > { %s2040_s25 = sadd.s32 (!%p3852_p10), %s3856_s24, %s2038_s21 }
 0x149   : > { %s2042_s29 = sadd.s32 (!%p3852_p10), %s2041_s26, %s2040_s25 }
 0x14a   : > { %s4620_s6 = scalar_lea.vmem (!%p3852_p10), %s5052_s0, %s2042_s29 }
 0x14b   : > { %s5070_s22 = smov (!%p2025_p11, %s2029_s22), %s2028_s12  ;;  %v2065_v48 = vld [vmem:[%s4620_s6] sm:$0x1]  ;;  %v2081_v56 = vld [vmem:[%s4620_s6 + $0x8] sm:$0x1] }
 0x14c   : > { %p3855_p12 = scmp.lt.s32.totalorder %s5070_s22, 0  ;;  %s2035_s28 = sadd.s32 4, %s5070_s22  ;;  %v2067_v49 = vld [vmem:[%s4620_s6 + $0x20] sm:$0x1]  ;;  %v2083_v57 = vld [vmem:[%s4620_s6 + $0x28] sm:$0x1] }
 0x14d   : > { %v2069_v50 = vld [vmem:[%s4620_s6 + $0x40] sm:$0x1]  ;;  %v2085_v58 = vld [vmem:[%s4620_s6 + $0x48] sm:$0x1] }
 0x14e   : > { %s5072_s28 = smov (!%p3855_p12, %s2035_s28), %s5070_s22  ;;  %v2071_v51 = vld [vmem:[%s4620_s6 + $0x60] sm:$0x1]  ;;  %v2087_v59 = vld [vmem:[%s4620_s6 + $0x68] sm:$0x1] }
 0x14f   : > { %s3891_s7 = smul.u32 144, %s5072_s28  ;;  %v2073_v52 = vld [vmem:[%s4620_s6 + $0x80] sm:$0x1]  ;;  %v2089_v60 = vld [vmem:[%s4620_s6 + $0x88] sm:$0x1]  ;;  %s2047_s9 = scalar_lea.sflag [#allocation3], %s5072_s28 }
 0x150   : > { %v2075_v53 = vld [vmem:[%s4620_s6 + $0xa0] sm:$0x1]  ;;  %v2091_v61 = vld [vmem:[%s4620_s6 + $0xa8] sm:$0x1] }
 0x151   : > { %v2077_v54 = vld [vmem:[%s4620_s6 + $0xc0] sm:$0x1]  ;;  %s4630_s8 = scalar_lea.vmem [#allocation2], %s3891_s7  ;;  %v2093_v62 = vld [vmem:[%s4620_s6 + $0xc8] sm:$0x1] }
 0x152   : > { %2066 = vst [vmem:[%s4630_s8] sm:$0x1] %v2065_v48  ;;  %2068 = vst [vmem:[%s4630_s8 + $0x1] sm:$0x1] %v2067_v49  ;;  %v2079_v55 = vld [vmem:[%s4620_s6 + $0xe0] sm:$0x1] }
 0x153   : > { %2070 = vst [vmem:[%s4630_s8 + $0x2] sm:$0x1] %v2069_v50  ;;  %2072 = vst [vmem:[%s4630_s8 + $0x3] sm:$0x1] %v2071_v51  ;;  %v2095_v63 = vld [vmem:[%s4620_s6 + $0xe8] sm:$0x1] }
 0x154   : > { %2074 = vst [vmem:[%s4630_s8 + $0x4] sm:$0x1] %v2073_v52  ;;  %2076 = vst [vmem:[%s4630_s8 + $0x5] sm:$0x1] %v2075_v53  ;;  %v2097_v0 = vld [vmem:[%s4620_s6 + $0x100] sm:$0x1] }
 0x155   : > { %2078 = vst [vmem:[%s4630_s8 + $0x6] sm:$0x1] %v2077_v54  ;;  %2080 = vst [vmem:[%s4630_s8 + $0x7] sm:$0x1] %v2079_v55  ;;  %v2099_v1 = vld [vmem:[%s4620_s6 + $0x120] sm:$0x1] }
 0x156   : > { %2082 = vst [vmem:[%s4630_s8 + $0x8] sm:$0x1] %v2081_v56  ;;  %2084 = vst [vmem:[%s4630_s8 + $0x9] sm:$0x1] %v2083_v57  ;;  %v2101_v2 = vld [vmem:[%s4620_s6 + $0x140] sm:$0x1] }
 0x157   : > { %2086 = vst [vmem:[%s4630_s8 + $0xa] sm:$0x1] %v2085_v58  ;;  %2088 = vst [vmem:[%s4630_s8 + $0xb] sm:$0x1] %v2087_v59  ;;  %v2103_v3 = vld [vmem:[%s4620_s6 + $0x160] sm:$0x1] }
 0x158   : > { %2090 = vst [vmem:[%s4630_s8 + $0xc] sm:$0x1] %v2089_v60  ;;  %2092 = vst [vmem:[%s4630_s8 + $0xd] sm:$0x1] %v2091_v61  ;;  %v2105_v4 = vld [vmem:[%s4620_s6 + $0x180] sm:$0x1] }
 0x159   : > { %2094 = vst [vmem:[%s4630_s8 + $0xe] sm:$0x1] %v2093_v62  ;;  %2096 = vst [vmem:[%s4630_s8 + $0xf] sm:$0x1] %v2095_v63  ;;  %v2107_v5 = vld [vmem:[%s4620_s6 + $0x1a0] sm:$0x1] }
 0x15a   : > { %2098 = vst [vmem:[%s4630_s8 + $0x10] sm:$0x1] %v2097_v0  ;;  %2100 = vst [vmem:[%s4630_s8 + $0x11] sm:$0x1] %v2099_v1  ;;  %v2109_v6 = vld [vmem:[%s4620_s6 + $0x1c0] sm:$0x1] }
 0x15b   : > { %2102 = vst [vmem:[%s4630_s8 + $0x12] sm:$0x1] %v2101_v2  ;;  %2104 = vst [vmem:[%s4630_s8 + $0x13] sm:$0x1] %v2103_v3  ;;  %v2111_v7 = vld [vmem:[%s4620_s6 + $0x1e0] sm:$0x1] }
 0x15c   : > { %2106 = vst [vmem:[%s4630_s8 + $0x14] sm:$0x1] %v2105_v4  ;;  %2108 = vst [vmem:[%s4630_s8 + $0x15] sm:$0x1] %v2107_v5  ;;  %v2113_v8 = vld [vmem:[%s4620_s6 + $0x108] sm:$0x1] }
 0x15d   : > { %2110 = vst [vmem:[%s4630_s8 + $0x16] sm:$0x1] %v2109_v6  ;;  %2112 = vst [vmem:[%s4630_s8 + $0x17] sm:$0x1] %v2111_v7  ;;  %v2115_v9 = vld [vmem:[%s4620_s6 + $0x128] sm:$0x1] }
 0x15e   : > { %2114 = vst [vmem:[%s4630_s8 + $0x18] sm:$0x1] %v2113_v8  ;;  %v2117_v10 = vld [vmem:[%s4620_s6 + $0x148] sm:$0x1]  ;;  %2116 = vst [vmem:[%s4630_s8 + $0x19] sm:$0x1] %v2115_v9 }
 0x15f   : > { %v2119_v11 = vld [vmem:[%s4620_s6 + $0x168] sm:$0x1]  ;;  %2118 = vst [vmem:[%s4630_s8 + $0x1a] sm:$0x1] %v2117_v10  ;;  %v2129_v16 = vld [vmem:[%s4620_s6 + $0x200] sm:$0x1] }
 0x160   : > { %2120 = vst [vmem:[%s4630_s8 + $0x1b] sm:$0x1] %v2119_v11  ;;  %v2121_v12 = vld [vmem:[%s4620_s6 + $0x188] sm:$0x1]  ;;  %v2131_v17 = vld [vmem:[%s4620_s6 + $0x220] sm:$0x1] }
 0x161   : > { %v2123_v13 = vld [vmem:[%s4620_s6 + $0x1a8] sm:$0x1]  ;;  %2122 = vst [vmem:[%s4630_s8 + $0x1c] sm:$0x1] %v2121_v12  ;;  %2130 = vst [vmem:[%s4630_s8 + $0x20] sm:$0x1] %v2129_v16 }
 0x162   : > { %v2125_v14 = vld [vmem:[%s4620_s6 + $0x1c8] sm:$0x1]  ;;  %2124 = vst [vmem:[%s4630_s8 + $0x1d] sm:$0x1] %v2123_v13  ;;  %2132 = vst [vmem:[%s4630_s8 + $0x21] sm:$0x1] %v2131_v17 }
 0x163   : > { %2126 = vst [vmem:[%s4630_s8 + $0x1e] sm:$0x1] %v2125_v14  ;;  %v2127_v15 = vld [vmem:[%s4620_s6 + $0x1e8] sm:$0x1]  ;;  %v2133_v18 = vld [vmem:[%s4620_s6 + $0x240] sm:$0x1] }
 0x164   : > { %2128 = vst [vmem:[%s4630_s8 + $0x1f] sm:$0x1] %v2127_v15  ;;  %v2135_v19 = vld [vmem:[%s4620_s6 + $0x260] sm:$0x1]  ;;  %2134 = vst [vmem:[%s4630_s8 + $0x22] sm:$0x1] %v2133_v18 }
 0x165   : > { %v2137_v20 = vld [vmem:[%s4620_s6 + $0x280] sm:$0x1]  ;;  %2136 = vst [vmem:[%s4630_s8 + $0x23] sm:$0x1] %v2135_v19  ;;  %v2145_v24 = vld [vmem:[%s4620_s6 + $0x208] sm:$0x1] }
 0x166   : > { %2138 = vst [vmem:[%s4630_s8 + $0x24] sm:$0x1] %v2137_v20  ;;  %v2139_v21 = vld [vmem:[%s4620_s6 + $0x2a0] sm:$0x1]  ;;  %v2147_v25 = vld [vmem:[%s4620_s6 + $0x228] sm:$0x1] }
 0x167   : > { %v2141_v22 = vld [vmem:[%s4620_s6 + $0x2c0] sm:$0x1]  ;;  %2140 = vst [vmem:[%s4630_s8 + $0x25] sm:$0x1] %v2139_v21  ;;  %v2149_v26 = vld [vmem:[%s4620_s6 + $0x248] sm:$0x1] }
 0x168   : > { %v2143_v23 = vld [vmem:[%s4620_s6 + $0x2e0] sm:$0x1]  ;;  %2142 = vst [vmem:[%s4630_s8 + $0x26] sm:$0x1] %v2141_v22  ;;  %2146 = vst [vmem:[%s4630_s8 + $0x28] sm:$0x1] %v2145_v24 }
 0x169   : > { %2144 = vst [vmem:[%s4630_s8 + $0x27] sm:$0x1] %v2143_v23  ;;  %2148 = vst [vmem:[%s4630_s8 + $0x29] sm:$0x1] %v2147_v25  ;;  %v2151_v27 = vld [vmem:[%s4620_s6 + $0x268] sm:$0x1] }
 0x16a   : > { %2150 = vst [vmem:[%s4630_s8 + $0x2a] sm:$0x1] %v2149_v26  ;;  %v2153_v28 = vld [vmem:[%s4620_s6 + $0x288] sm:$0x1]  ;;  %2152 = vst [vmem:[%s4630_s8 + $0x2b] sm:$0x1] %v2151_v27 }
 0x16b   : > { %v2155_v29 = vld [vmem:[%s4620_s6 + $0x2a8] sm:$0x1]  ;;  %2154 = vst [vmem:[%s4630_s8 + $0x2c] sm:$0x1] %v2153_v28  ;;  %v2161_v32 = vld [vmem:[%s4620_s6 + $0x300] sm:$0x1] }
 0x16c   : > { %2156 = vst [vmem:[%s4630_s8 + $0x2d] sm:$0x1] %v2155_v29  ;;  %v2157_v30 = vld [vmem:[%s4620_s6 + $0x2c8] sm:$0x1]  ;;  %2162 = vst [vmem:[%s4630_s8 + $0x30] sm:$0x1] %v2161_v32 }
 0x16d   : > { %v2159_v31 = vld [vmem:[%s4620_s6 + $0x2e8] sm:$0x1]  ;;  %2158 = vst [vmem:[%s4630_s8 + $0x2e] sm:$0x1] %v2157_v30  ;;  %v2163_v33 = vld [vmem:[%s4620_s6 + $0x320] sm:$0x1] }
 0x16e   : > { %2160 = vst [vmem:[%s4630_s8 + $0x2f] sm:$0x1] %v2159_v31  ;;  %v2165_v34 = vld [vmem:[%s4620_s6 + $0x340] sm:$0x1]  ;;  %2164 = vst [vmem:[%s4630_s8 + $0x31] sm:$0x1] %v2163_v33 }
 0x16f   : > { %v2167_v35 = vld [vmem:[%s4620_s6 + $0x360] sm:$0x1]  ;;  %2166 = vst [vmem:[%s4630_s8 + $0x32] sm:$0x1] %v2165_v34  ;;  %v2177_v40 = vld [vmem:[%s4620_s6 + $0x308] sm:$0x1] }
 0x170   : > { %2168 = vst [vmem:[%s4630_s8 + $0x33] sm:$0x1] %v2167_v35  ;;  %v2169_v36 = vld [vmem:[%s4620_s6 + $0x380] sm:$0x1]  ;;  %v2179_v41 = vld [vmem:[%s4620_s6 + $0x328] sm:$0x1] }
 0x171   : > { %v2171_v37 = vld [vmem:[%s4620_s6 + $0x3a0] sm:$0x1]  ;;  %2170 = vst [vmem:[%s4630_s8 + $0x34] sm:$0x1] %v2169_v36  ;;  %2178 = vst [vmem:[%s4630_s8 + $0x38] sm:$0x1] %v2177_v40 }
 0x172   : > { %v2173_v38 = vld [vmem:[%s4620_s6 + $0x3c0] sm:$0x1]  ;;  %2172 = vst [vmem:[%s4630_s8 + $0x35] sm:$0x1] %v2171_v37  ;;  %2180 = vst [vmem:[%s4630_s8 + $0x39] sm:$0x1] %v2179_v41 }
 0x173   : > { %2174 = vst [vmem:[%s4630_s8 + $0x36] sm:$0x1] %v2173_v38  ;;  %v2175_v39 = vld [vmem:[%s4620_s6 + $0x3e0] sm:$0x1]  ;;  %v2181_v42 = vld [vmem:[%s4620_s6 + $0x348] sm:$0x1] }
 0x174   : > { %2176 = vst [vmem:[%s4630_s8 + $0x37] sm:$0x1] %v2175_v39  ;;  %v2183_v43 = vld [vmem:[%s4620_s6 + $0x368] sm:$0x1]  ;;  %2182 = vst [vmem:[%s4630_s8 + $0x3a] sm:$0x1] %v2181_v42 }
 0x175   : > { %v2185_v44 = vld [vmem:[%s4620_s6 + $0x388] sm:$0x1]  ;;  %2184 = vst [vmem:[%s4630_s8 + $0x3b] sm:$0x1] %v2183_v43  ;;  %v2193_v48 = vld [vmem:[%s4620_s6 + $0x400] sm:$0x1] }
 0x176   : > { %2186 = vst [vmem:[%s4630_s8 + $0x3c] sm:$0x1] %v2185_v44  ;;  %v2187_v45 = vld [vmem:[%s4620_s6 + $0x3a8] sm:$0x1]  ;;  %v2195_v49 = vld [vmem:[%s4620_s6 + $0x420] sm:$0x1] }
 0x177   : > { %v2189_v46 = vld [vmem:[%s4620_s6 + $0x3c8] sm:$0x1]  ;;  %2188 = vst [vmem:[%s4630_s8 + $0x3d] sm:$0x1] %v2187_v45  ;;  %v2197_v50 = vld [vmem:[%s4620_s6 + $0x440] sm:$0x1] }
 0x178   : > { %v2191_v47 = vld [vmem:[%s4620_s6 + $0x3e8] sm:$0x1]  ;;  %2190 = vst [vmem:[%s4630_s8 + $0x3e] sm:$0x1] %v2189_v46  ;;  %2194 = vst [vmem:[%s4630_s8 + $0x40] sm:$0x1] %v2193_v48 }
 0x179   : > { %2192 = vst [vmem:[%s4630_s8 + $0x3f] sm:$0x1] %v2191_v47  ;;  %2196 = vst [vmem:[%s4630_s8 + $0x41] sm:$0x1] %v2195_v49  ;;  %v2199_v51 = vld [vmem:[%s4620_s6 + $0x460] sm:$0x1] }
 0x17a   : > { %2198 = vst [vmem:[%s4630_s8 + $0x42] sm:$0x1] %v2197_v50  ;;  %v2201_v52 = vld [vmem:[%s4620_s6 + $0x480] sm:$0x1]  ;;  %2200 = vst [vmem:[%s4630_s8 + $0x43] sm:$0x1] %v2199_v51 }
 0x17b   : > { %v2203_v53 = vld [vmem:[%s4620_s6 + $0x4a0] sm:$0x1]  ;;  %2202 = vst [vmem:[%s4630_s8 + $0x44] sm:$0x1] %v2201_v52  ;;  %v2209_v56 = vld [vmem:[%s4620_s6 + $0x408] sm:$0x1] }
 0x17c   : > { %2204 = vst [vmem:[%s4630_s8 + $0x45] sm:$0x1] %v2203_v53  ;;  %v2205_v54 = vld [vmem:[%s4620_s6 + $0x4c0] sm:$0x1]  ;;  %2210 = vst [vmem:[%s4630_s8 + $0x48] sm:$0x1] %v2209_v56 }
 0x17d   : > { %v2207_v55 = vld [vmem:[%s4620_s6 + $0x4e0] sm:$0x1]  ;;  %2206 = vst [vmem:[%s4630_s8 + $0x46] sm:$0x1] %v2205_v54  ;;  %v2211_v57 = vld [vmem:[%s4620_s6 + $0x428] sm:$0x1] }
 0x17e   : > { %2208 = vst [vmem:[%s4630_s8 + $0x47] sm:$0x1] %v2207_v55  ;;  %v2213_v58 = vld [vmem:[%s4620_s6 + $0x448] sm:$0x1]  ;;  %2212 = vst [vmem:[%s4630_s8 + $0x49] sm:$0x1] %v2211_v57 }
 0x17f   : > { %v2215_v59 = vld [vmem:[%s4620_s6 + $0x468] sm:$0x1]  ;;  %2214 = vst [vmem:[%s4630_s8 + $0x4a] sm:$0x1] %v2213_v58  ;;  %v2225_v0 = vld [vmem:[%s4620_s6 + $0x500] sm:$0x1] }
 0x180   : > { %2216 = vst [vmem:[%s4630_s8 + $0x4b] sm:$0x1] %v2215_v59  ;;  %v2217_v60 = vld [vmem:[%s4620_s6 + $0x488] sm:$0x1]  ;;  %v2227_v1 = vld [vmem:[%s4620_s6 + $0x520] sm:$0x1] }
 0x181   : > { %v2219_v61 = vld [vmem:[%s4620_s6 + $0x4a8] sm:$0x1]  ;;  %2218 = vst [vmem:[%s4630_s8 + $0x4c] sm:$0x1] %v2217_v60  ;;  %2226 = vst [vmem:[%s4630_s8 + $0x50] sm:$0x1] %v2225_v0 }
 0x182   : > { %v2221_v62 = vld [vmem:[%s4620_s6 + $0x4c8] sm:$0x1]  ;;  %2220 = vst [vmem:[%s4630_s8 + $0x4d] sm:$0x1] %v2219_v61  ;;  %2228 = vst [vmem:[%s4630_s8 + $0x51] sm:$0x1] %v2227_v1 }
 0x183   : > { %2222 = vst [vmem:[%s4630_s8 + $0x4e] sm:$0x1] %v2221_v62  ;;  %v2223_v63 = vld [vmem:[%s4620_s6 + $0x4e8] sm:$0x1]  ;;  %v2229_v2 = vld [vmem:[%s4620_s6 + $0x540] sm:$0x1] }
 0x184   : > { %2224 = vst [vmem:[%s4630_s8 + $0x4f] sm:$0x1] %v2223_v63  ;;  %v2231_v3 = vld [vmem:[%s4620_s6 + $0x560] sm:$0x1]  ;;  %2230 = vst [vmem:[%s4630_s8 + $0x52] sm:$0x1] %v2229_v2 }
 0x185   : > { %v2233_v4 = vld [vmem:[%s4620_s6 + $0x580] sm:$0x1]  ;;  %2232 = vst [vmem:[%s4630_s8 + $0x53] sm:$0x1] %v2231_v3  ;;  %v2241_v8 = vld [vmem:[%s4620_s6 + $0x508] sm:$0x1] }
 0x186   : > { %2234 = vst [vmem:[%s4630_s8 + $0x54] sm:$0x1] %v2233_v4  ;;  %v2235_v5 = vld [vmem:[%s4620_s6 + $0x5a0] sm:$0x1]  ;;  %v2243_v9 = vld [vmem:[%s4620_s6 + $0x528] sm:$0x1] }
 0x187   : > { %v2237_v6 = vld [vmem:[%s4620_s6 + $0x5c0] sm:$0x1]  ;;  %2236 = vst [vmem:[%s4630_s8 + $0x55] sm:$0x1] %v2235_v5  ;;  %v2245_v10 = vld [vmem:[%s4620_s6 + $0x548] sm:$0x1] }
 0x188   : > { %v2239_v7 = vld [vmem:[%s4620_s6 + $0x5e0] sm:$0x1]  ;;  %2238 = vst [vmem:[%s4630_s8 + $0x56] sm:$0x1] %v2237_v6  ;;  %2242 = vst [vmem:[%s4630_s8 + $0x58] sm:$0x1] %v2241_v8 }
 0x189   : > { %2240 = vst [vmem:[%s4630_s8 + $0x57] sm:$0x1] %v2239_v7  ;;  %2244 = vst [vmem:[%s4630_s8 + $0x59] sm:$0x1] %v2243_v9  ;;  %v2247_v11 = vld [vmem:[%s4620_s6 + $0x568] sm:$0x1] }
 0x18a   : > { %2246 = vst [vmem:[%s4630_s8 + $0x5a] sm:$0x1] %v2245_v10  ;;  %v2249_v12 = vld [vmem:[%s4620_s6 + $0x588] sm:$0x1]  ;;  %2248 = vst [vmem:[%s4630_s8 + $0x5b] sm:$0x1] %v2247_v11 }
 0x18b   : > { %v2251_v13 = vld [vmem:[%s4620_s6 + $0x5a8] sm:$0x1]  ;;  %2250 = vst [vmem:[%s4630_s8 + $0x5c] sm:$0x1] %v2249_v12  ;;  %v2257_v16 = vld [vmem:[%s4620_s6 + $0x600] sm:$0x1] }
 0x18c   : > { %2252 = vst [vmem:[%s4630_s8 + $0x5d] sm:$0x1] %v2251_v13  ;;  %v2253_v14 = vld [vmem:[%s4620_s6 + $0x5c8] sm:$0x1]  ;;  %2258 = vst [vmem:[%s4630_s8 + $0x60] sm:$0x1] %v2257_v16 }
 0x18d   : > { %v2255_v15 = vld [vmem:[%s4620_s6 + $0x5e8] sm:$0x1]  ;;  %2254 = vst [vmem:[%s4630_s8 + $0x5e] sm:$0x1] %v2253_v14  ;;  %v2259_v17 = vld [vmem:[%s4620_s6 + $0x620] sm:$0x1] }
 0x18e   : > { %2256 = vst [vmem:[%s4630_s8 + $0x5f] sm:$0x1] %v2255_v15  ;;  %v2261_v18 = vld [vmem:[%s4620_s6 + $0x640] sm:$0x1]  ;;  %2260 = vst [vmem:[%s4630_s8 + $0x61] sm:$0x1] %v2259_v17 }
 0x18f   : > { %v2263_v19 = vld [vmem:[%s4620_s6 + $0x660] sm:$0x1]  ;;  %2262 = vst [vmem:[%s4630_s8 + $0x62] sm:$0x1] %v2261_v18  ;;  %v2273_v24 = vld [vmem:[%s4620_s6 + $0x608] sm:$0x1] }
 0x190   : > { %2264 = vst [vmem:[%s4630_s8 + $0x63] sm:$0x1] %v2263_v19  ;;  %v2265_v20 = vld [vmem:[%s4620_s6 + $0x680] sm:$0x1]  ;;  %v2275_v25 = vld [vmem:[%s4620_s6 + $0x628] sm:$0x1] }
 0x191   : > { %v2267_v21 = vld [vmem:[%s4620_s6 + $0x6a0] sm:$0x1]  ;;  %2266 = vst [vmem:[%s4630_s8 + $0x64] sm:$0x1] %v2265_v20  ;;  %2274 = vst [vmem:[%s4630_s8 + $0x68] sm:$0x1] %v2273_v24 }
 0x192   : > { %v2269_v22 = vld [vmem:[%s4620_s6 + $0x6c0] sm:$0x1]  ;;  %2268 = vst [vmem:[%s4630_s8 + $0x65] sm:$0x1] %v2267_v21  ;;  %2276 = vst [vmem:[%s4630_s8 + $0x69] sm:$0x1] %v2275_v25 }
 0x193   : > { %2270 = vst [vmem:[%s4630_s8 + $0x66] sm:$0x1] %v2269_v22  ;;  %v2271_v23 = vld [vmem:[%s4620_s6 + $0x6e0] sm:$0x1]  ;;  %v2277_v26 = vld [vmem:[%s4620_s6 + $0x648] sm:$0x1] }
 0x194   : > { %2272 = vst [vmem:[%s4630_s8 + $0x67] sm:$0x1] %v2271_v23  ;;  %v2279_v27 = vld [vmem:[%s4620_s6 + $0x668] sm:$0x1]  ;;  %2278 = vst [vmem:[%s4630_s8 + $0x6a] sm:$0x1] %v2277_v26 }
 0x195   : > { %v2281_v28 = vld [vmem:[%s4620_s6 + $0x688] sm:$0x1]  ;;  %2280 = vst [vmem:[%s4630_s8 + $0x6b] sm:$0x1] %v2279_v27  ;;  %v2289_v32 = vld [vmem:[%s4620_s6 + $0x700] sm:$0x1] }
 0x196   : > { %2282 = vst [vmem:[%s4630_s8 + $0x6c] sm:$0x1] %v2281_v28  ;;  %v2283_v29 = vld [vmem:[%s4620_s6 + $0x6a8] sm:$0x1]  ;;  %v2291_v33 = vld [vmem:[%s4620_s6 + $0x720] sm:$0x1] }
 0x197   : > { %v2285_v30 = vld [vmem:[%s4620_s6 + $0x6c8] sm:$0x1]  ;;  %2284 = vst [vmem:[%s4630_s8 + $0x6d] sm:$0x1] %v2283_v29  ;;  %v2293_v34 = vld [vmem:[%s4620_s6 + $0x740] sm:$0x1] }
 0x198   : > { %v2287_v31 = vld [vmem:[%s4620_s6 + $0x6e8] sm:$0x1]  ;;  %2286 = vst [vmem:[%s4630_s8 + $0x6e] sm:$0x1] %v2285_v30  ;;  %2290 = vst [vmem:[%s4630_s8 + $0x70] sm:$0x1] %v2289_v32 }
 0x199   : > { %2288 = vst [vmem:[%s4630_s8 + $0x6f] sm:$0x1] %v2287_v31  ;;  %2292 = vst [vmem:[%s4630_s8 + $0x71] sm:$0x1] %v2291_v33  ;;  %v2295_v35 = vld [vmem:[%s4620_s6 + $0x760] sm:$0x1] }
 0x19a   : > { %2294 = vst [vmem:[%s4630_s8 + $0x72] sm:$0x1] %v2293_v34  ;;  %v2297_v36 = vld [vmem:[%s4620_s6 + $0x780] sm:$0x1]  ;;  %2296 = vst [vmem:[%s4630_s8 + $0x73] sm:$0x1] %v2295_v35 }
 0x19b   : > { %v2299_v37 = vld [vmem:[%s4620_s6 + $0x7a0] sm:$0x1]  ;;  %2298 = vst [vmem:[%s4630_s8 + $0x74] sm:$0x1] %v2297_v36  ;;  %v2305_v40 = vld [vmem:[%s4620_s6 + $0x708] sm:$0x1] }
 0x19c   : > { %2300 = vst [vmem:[%s4630_s8 + $0x75] sm:$0x1] %v2299_v37  ;;  %v2301_v38 = vld [vmem:[%s4620_s6 + $0x7c0] sm:$0x1]  ;;  %2306 = vst [vmem:[%s4630_s8 + $0x78] sm:$0x1] %v2305_v40 }
 0x19d   : > { %v2303_v39 = vld [vmem:[%s4620_s6 + $0x7e0] sm:$0x1]  ;;  %2302 = vst [vmem:[%s4630_s8 + $0x76] sm:$0x1] %v2301_v38  ;;  %v2307_v41 = vld [vmem:[%s4620_s6 + $0x728] sm:$0x1] }
 0x19e   : > { %2304 = vst [vmem:[%s4630_s8 + $0x77] sm:$0x1] %v2303_v39  ;;  %v2309_v42 = vld [vmem:[%s4620_s6 + $0x748] sm:$0x1]  ;;  %2308 = vst [vmem:[%s4630_s8 + $0x79] sm:$0x1] %v2307_v41 }
 0x19f   : > { %v2311_v43 = vld [vmem:[%s4620_s6 + $0x768] sm:$0x1]  ;;  %2310 = vst [vmem:[%s4630_s8 + $0x7a] sm:$0x1] %v2309_v42  ;;  %v2321_v48 = vld [vmem:[%s4620_s6 + $0x800] sm:$0x1] }
 0x1a0   : > { %2312 = vst [vmem:[%s4630_s8 + $0x7b] sm:$0x1] %v2311_v43  ;;  %v2313_v44 = vld [vmem:[%s4620_s6 + $0x788] sm:$0x1]  ;;  %v2323_v49 = vld [vmem:[%s4620_s6 + $0x820] sm:$0x1] }
 0x1a1   : > { %v2315_v45 = vld [vmem:[%s4620_s6 + $0x7a8] sm:$0x1]  ;;  %2314 = vst [vmem:[%s4630_s8 + $0x7c] sm:$0x1] %v2313_v44  ;;  %2322 = vst [vmem:[%s4630_s8 + $0x80] sm:$0x1] %v2321_v48 }
 0x1a2   : > { %v2317_v46 = vld [vmem:[%s4620_s6 + $0x7c8] sm:$0x1]  ;;  %2316 = vst [vmem:[%s4630_s8 + $0x7d] sm:$0x1] %v2315_v45  ;;  %2324 = vst [vmem:[%s4630_s8 + $0x81] sm:$0x1] %v2323_v49 }
 0x1a3   : > { %2318 = vst [vmem:[%s4630_s8 + $0x7e] sm:$0x1] %v2317_v46  ;;  %v2319_v47 = vld [vmem:[%s4620_s6 + $0x7e8] sm:$0x1]  ;;  %v2325_v50 = vld [vmem:[%s4620_s6 + $0x840] sm:$0x1] }
 0x1a4   : > { %2320 = vst [vmem:[%s4630_s8 + $0x7f] sm:$0x1] %v2319_v47  ;;  %v2327_v51 = vld [vmem:[%s4620_s6 + $0x860] sm:$0x1]  ;;  %2326 = vst [vmem:[%s4630_s8 + $0x82] sm:$0x1] %v2325_v50 }
 0x1a5   : > { %v2329_v52 = vld [vmem:[%s4620_s6 + $0x880] sm:$0x1]  ;;  %2328 = vst [vmem:[%s4630_s8 + $0x83] sm:$0x1] %v2327_v51  ;;  %v2337_v56 = vld [vmem:[%s4620_s6 + $0x808] sm:$0x1] }
 0x1a6   : > { %2330 = vst [vmem:[%s4630_s8 + $0x84] sm:$0x1] %v2329_v52  ;;  %v2331_v53 = vld [vmem:[%s4620_s6 + $0x8a0] sm:$0x1]  ;;  %v2339_v57 = vld [vmem:[%s4620_s6 + $0x828] sm:$0x1] }
 0x1a7   : > { %v2333_v54 = vld [vmem:[%s4620_s6 + $0x8c0] sm:$0x1]  ;;  %2332 = vst [vmem:[%s4630_s8 + $0x85] sm:$0x1] %v2331_v53  ;;  %v2341_v58 = vld [vmem:[%s4620_s6 + $0x848] sm:$0x1] }
 0x1a8   : > { %v2335_v55 = vld [vmem:[%s4620_s6 + $0x8e0] sm:$0x1]  ;;  %2334 = vst [vmem:[%s4630_s8 + $0x86] sm:$0x1] %v2333_v54  ;;  %2338 = vst [vmem:[%s4630_s8 + $0x88] sm:$0x1] %v2337_v56 }
 0x1a9   : > { %2336 = vst [vmem:[%s4630_s8 + $0x87] sm:$0x1] %v2335_v55  ;;  %2340 = vst [vmem:[%s4630_s8 + $0x89] sm:$0x1] %v2339_v57  ;;  %v2343_v59 = vld [vmem:[%s4620_s6 + $0x868] sm:$0x1] }
 0x1aa   : > { %2342 = vst [vmem:[%s4630_s8 + $0x8a] sm:$0x1] %v2341_v58  ;;  %v2345_v60 = vld [vmem:[%s4620_s6 + $0x888] sm:$0x1]  ;;  %2344 = vst [vmem:[%s4630_s8 + $0x8b] sm:$0x1] %v2343_v59 }
 0x1ab   : > { %v2347_v61 = vld [vmem:[%s4620_s6 + $0x8a8] sm:$0x1]  ;;  %2346 = vst [vmem:[%s4630_s8 + $0x8c] sm:$0x1] %v2345_v60 }
 0x1ac   : > { %2348 = vst [vmem:[%s4630_s8 + $0x8d] sm:$0x1] %v2347_v61  ;;  %v2349_v62 = vld [vmem:[%s4620_s6 + $0x8c8] sm:$0x1] }
 0x1ad   : > { %v2351_v63 = vld [vmem:[%s4620_s6 + $0x8e8] sm:$0x1]  ;;  %2350 = vst [vmem:[%s4630_s8 + $0x8e] sm:$0x1] %v2349_v62 }
 0x1ae   : > { %2352 = vst [vmem:[%s4630_s8 + $0x8f] sm:$0x1] %v2351_v63 }
 0x1af   : > { %2671 = vsyncadd %s2047_s9, 2304 }
 0x1b0 PF: > { %p3964_p13 = scmp.eq.s32.totalorder %s4072_s14, 0 }
 0x1b2   : > { %4053 = dma.done.wait (%p3964_p13), [#allocation3], 2304 }
 0x1b3   : > { %4055 = vsyncadd (%p3964_p13), [#allocation3], 4294964992 }
 0x1b4   : > { %4057 = dma.done.wait (%p3964_p13), [#allocation3 + $0x1], 2304 }
 0x1b5   : > { %4059 = vsyncadd (%p3964_p13), [#allocation3 + $0x1], 4294964992  ;;  %s2681_s10 = sadd.s32 2, %s4072_s14 }
 0x1b6   : > { %p2682_p0 = scmp.lt.s32.totalorder %s2681_s10, 0  ;;  %s2683_s11 = ssub.s32 0, %s2681_s10 }
 0x1b7   : > { %s3859_s12 = smin.u32 %s2683_s11, %s2681_s10 }
 0x1b8   : > { %s2685_s21 = sand.u32 3, %s3859_s12  }
 0x1b9   : > { %s2686_s22 = ssub.s32 0, %s2685_s21 }
 0x1ba   : > { %s5074_s22 = smov (!%p2682_p0, %s2686_s22), %s2685_s21 }
 0x1bb   : > { %p3861_p1 = scmp.lt.s32.totalorder %s5074_s22, 0  ;;  %s2692_s24 = sadd.s32 4, %s5074_s22 }
 0x1bd   : > { %s5076_s24 = smov (!%p3861_p1, %s2692_s24), %s5074_s22 }
 0x1be   : > { %s3892_s25 = smul.u32 144, %s5076_s24  ;;  %s2697_s28 = scalar_lea.sflag [#allocation3], %s5076_s24 }
 0x1c0   : > { %s4916_s26 = scalar_lea.vmem [#allocation2], %s3892_s25 }
 0x1c1   : > { %4060 = dma.done.wait %s2697_s28, 2304 }
 0x1c2   : > { %4061 = vsyncadd %s2697_s28, 4294964992  ;;  %p2703_p2 = scmp.lt.s32.totalorder %s4072_s14, 0  ;;  %s2704_s29 = ssub.s32 0, %s4072_s14  ;;  %v4090_v0 = vmov 0.0   ;;  %v4091_v1 = vmov 0   ;;  %v2944_v43 = vld [vmem:[%s4916_s26 + $0x8] sm:$0xff] }
 0x1c3   : > { %s3863_s4 = smin.u32 %s4072_s14, %s2704_s29  ;;  %s2739_s5 = sadd.s32 1, %s4072_s14  ;;  %2844 = vmatprep.mubr.f32.mxu1 %v4090_v0  ;;  %2927 = vmatprep.mubr.f32.mxu0 %v4090_v0  ;;  %v2946_v46 = vld [vmem:[%s4916_s26 + $0x18] sm:$0xff]  ;;  %v2943_v48 = vld [vmem:[%s4916_s26] sm:$0xff]  ;;  %v2945_v51 = vld [vmem:[%s4916_s26 + $0x10] sm:$0xff]  ;;  %vm2773_vm0 = vcmask 588800  }
 0x1c4   : > { %s2706_s6 = sand.u32 3, %s3863_s4   ;;  %4023 = vset.pattern.permute.xlu0 %v4091_v1  ;;  %s2741_s8 = ssub.s32 0, %s2739_s5  ;;  %v3048_v49 = vld [vmem:[%s5054_s2] sm:$0xff]  ;;  %v2948_v52 = vld [vmem:[%s4916_s26 + $0x28] sm:$0xff]  ;;  %v2950_v53 = vld [vmem:[%s4916_s26 + $0x38] sm:$0xff]  ;;  %v3927_v59 = vpack.c.bf16 %v2946_v46, %v2944_v43  ;;  %v3929_v61 = vpack.c.bf16 %v2945_v51, %v2943_v48 }
 0x1c5   : > { %s2707_s7 = ssub.s32 0, %s2706_s6  ;;  %s3869_s9 = smin.u32 %s2741_s8, %s2739_s5  ;;  %3052 = vperm.xlu0 %4023, %v3048_v49   ;;  %v3049_v57 = vld [vmem:[%s5054_s2 + $0x8] sm:$0xff]  ;;  %v2701_v60 = vld [vmem:[%s5053_s1] sm:$0xff]  ;;  %v3931_v63 = vpack.c.bf16 %v2950_v53, %v2948_v52 }
 0x1c6   : > { %s5078_s7 = smov (!%p2703_p2, %s2707_s7), %s2706_s6  ;;  %p2740_p4 = scmp.lt.s32.totalorder %s2739_s5, 0  ;;  %v2947_v1 = vld [vmem:[%s4916_s26 + $0x20] sm:$0xff] }
 0x1c7   : > { %p3865_p3 = scmp.lt.s32.totalorder %s5078_s7, 0  ;;  %s2713_s10 = sadd.s32 4, %s5078_s7 }
 0x1c8   : > { %s2743_s11 = sand.u32 3, %s3869_s9   ;;  %s3883_s4 = sshll.u32 (%p4158_p5), %s4076_s15, 5 }
 0x1c9   : > { %s5080_s10 = smov (!%p3865_p3, %s2713_s10), %s5078_s7  ;;  %s2744_s12 = ssub.s32 0, %s2743_s11  ;;  %3057 = vperm.xlu0 %4023, %v3049_v57  }
 0x1ca   : > { %s3893_s21 = smul.u32 144, %s5080_s10  ;;  %s5082_s12 = smov (!%p2740_p4, %s2744_s12), %s2743_s11 }
 0x1cb   : > { %p3871_p6 = scmp.lt.s32.totalorder %s5082_s12, 0  ;;  %s2750_s24 = sadd.s32 4, %s5082_s12 }
 0x1cc   : > { %s4924_s22 = scalar_lea.vmem [#allocation2], %s3893_s21 }
 0x1cd   : > { %v2719_v2 = vld [vmem:[%s4924_s22 + $0x8] sm:$0xff]  ;;  %v2721_v3 = vld [vmem:[%s4924_s22 + $0x18] sm:$0xff]  ;;  %v2718_v4 = vld [vmem:[%s4924_s22] sm:$0xff]  ;;  %s5084_s24 = smov (!%p3871_p6, %s2750_s24), %s5082_s12 }
 0x1ce   : > { %v3911_v5 = vpack.c.bf16 %v2721_v3, %v2719_v2  ;;  %v2720_v6 = vld [vmem:[%s4924_s22 + $0x10] sm:$0xff]  ;;  %v2723_v7 = vld [vmem:[%s4924_s22 + $0x28] sm:$0xff]  ;;  %v2725_v8 = vld [vmem:[%s4924_s22 + $0x38] sm:$0xff]  ;;  %s3894_s25 = smul.u32 144, %s5084_s24 }
 0x1cf   : > { %v3913_v9 = vpack.c.bf16 %v2720_v6, %v2718_v4  ;;  %v3915_v10 = vpack.c.bf16 %v2725_v8, %v2723_v7  ;;  %v2722_v11 = vld [vmem:[%s4924_s22 + $0x20] sm:$0xff]  ;;  %v2724_v12 = vld [vmem:[%s4924_s22 + $0x30] sm:$0xff]  ;;  %v2727_v13 = vld [vmem:[%s4924_s22 + $0x48] sm:$0xff] }
 0x1d0   : > { %3912 = vmatprep.subr.bf16.mxu0 %v3911_v5  ;;  %v2729_v14 = vld [vmem:[%s4924_s22 + $0x58] sm:$0xff]  ;;  %v3917_v15 = vpack.c.bf16 %v2724_v12, %v2722_v11  ;;  %v2726_v17 = vld [vmem:[%s4924_s22 + $0x40] sm:$0xff]  ;;  %v2728_v18 = vld [vmem:[%s4924_s22 + $0x50] sm:$0xff]  ;;  %s4940_s28 = scalar_lea.vmem [#allocation2], %s3894_s25 }
 0x1d1   : > { %3914 = vmatpush1.bf16.msra.mxu0 %v3913_v9  ;;  %v3919_v16 = vpack.c.bf16 %v2729_v14, %v2727_v13  ;;  %v2731_v19 = vld [vmem:[%s4924_s22 + $0x68] sm:$0xff]  ;;  %v2733_v20 = vld [vmem:[%s4924_s22 + $0x78] sm:$0xff]  ;;  %v2755_v23 = vld [vmem:[%s4940_s28] sm:$0xff]  ;;  %v3921_v30 = vpack.c.bf16 %v2728_v18, %v2726_v17 }
 0x1d2   : > { %3916 = vmatprep.subr.bf16.mxu0 %v3915_v10  ;;  %v2756_v21 = vld [vmem:[%s4940_s28 + $0x8] sm:$0xff]  ;;  %v2758_v22 = vld [vmem:[%s4940_s28 + $0x18] sm:$0xff]  ;;  %v2730_v24 = vld [vmem:[%s4924_s22 + $0x60] sm:$0xff]  ;;  %v3923_v36 = vpack.c.bf16 %v2733_v20, %v2731_v19 }
 0x1d3   : > { %v2732_v25 = vld [vmem:[%s4924_s22 + $0x70] sm:$0xff]  ;;  %v3895_v26 = vpack.c.bf16 %v2758_v22, %v2756_v21  ;;  %v2760_v28 = vld [vmem:[%s4940_s28 + $0x28] sm:$0xff]  ;;  %v2762_v29 = vld [vmem:[%s4940_s28 + $0x38] sm:$0xff] }
 0x1d4   : > { %v2757_v27 = vld [vmem:[%s4940_s28 + $0x10] sm:$0xff]  ;;  %v3899_v32 = vpack.c.bf16 %v2762_v29, %v2760_v28  ;;  %v2759_v33 = vld [vmem:[%s4940_s28 + $0x20] sm:$0xff]  ;;  %v2764_v35 = vld [vmem:[%s4940_s28 + $0x48] sm:$0xff]  ;;  %v3925_v42 = vpack.c.bf16 %v2732_v25, %v2730_v24 }
 0x1d5   : > { %3918 = vmatpush1.bf16.msra.mxu0 %v3917_v15  ;;  %v3897_v31 = vpack.c.bf16 %v2757_v27, %v2755_v23  ;;  %v2761_v34 = vld [vmem:[%s4940_s28 + $0x30] sm:$0xff]  ;;  %3896 = vmatprep.subr.bf16.mxu1 %v3895_v26  ;;  %v2766_v37 = vld [vmem:[%s4940_s28 + $0x58] sm:$0xff]  ;;  %v2763_v40 = vld [vmem:[%s4940_s28 + $0x40] sm:$0xff] }
 0x1d6   : > { %3920 = vmatprep.subr.bf16.mxu0 %v3919_v16  ;;  %v3901_v38 = vpack.c.bf16 %v2761_v34, %v2759_v33  ;;  %v3903_v39 = vpack.c.bf16 %v2766_v37, %v2764_v35  ;;  %v2765_v41 = vld [vmem:[%s4940_s28 + $0x50] sm:$0xff]  ;;  %v2768_v44 = vld [vmem:[%s4940_s28 + $0x68] sm:$0xff]  ;;  %v2770_v45 = vld [vmem:[%s4940_s28 + $0x78] sm:$0xff] }
 0x1d7   : > { %3898 = vmatpush1.bf16.msra.mxu1 %v3897_v31  ;;  %v2735_v47 = vld [vmem:[%s4924_s22 + $0x88] sm:$0xff]  ;;  %v3905_v50 = vpack.c.bf16 %v2765_v41, %v2763_v40  ;;  %v3907_v54 = vpack.c.bf16 %v2770_v45, %v2768_v44  ;;  %v2767_v55 = vld [vmem:[%s4940_s28 + $0x60] sm:$0xff]  ;;  %v2769_v56 = vld [vmem:[%s4940_s28 + $0x70] sm:$0xff] }
 0x1d8   : > { %3900 = vmatprep.subr.bf16.mxu1 %v3899_v32  ;;  %v2734_v58 = vld [vmem:[%s4924_s22 + $0x80] sm:$0xff]  ;;  %v3909_v62 = vpack.c.bf16 %v2769_v56, %v2767_v55  ;;  %v2949_v2 = vld [vmem:[%s4916_s26 + $0x30] sm:$0xff]  ;;  %v2952_v3 = vld [vmem:[%s4916_s26 + $0x48] sm:$0xff] }
 0x1d9   : > { %3922 = vmatpush1.bf16.msra.mxu0 %v3921_v30  ;;  %v2954_v4 = vld [vmem:[%s4916_s26 + $0x58] sm:$0xff]  ;;  %v2772_v5 = vld [vmem:[%s4940_s28 + $0x88] sm:$0xff]  ;;  %v3933_v6 = vpack.c.bf16 %v2949_v2, %v2947_v1  ;;  %v2951_v9 = vld [vmem:[%s4916_s26 + $0x40] sm:$0xff] }
 0x1da   : > { %3924 = vmatprep.subr.bf16.mxu0 %v3923_v36  ;;  %v2702_v7 = vld [vmem:[%s5053_s1 + $0x8] sm:$0xff]  ;;  %v3935_v8 = vpack.c.bf16 %v2954_v4, %v2952_v3  ;;  %v2953_v10 = vld [vmem:[%s4916_s26 + $0x50] sm:$0xff]  ;;  %v2771_v11 = vld [vmem:[%s4940_s28 + $0x80] sm:$0xff] }
 0x1db   : > { %3902 = vmatpush1.bf16.msra.mxu1 %v3901_v38  ;;  %v2956_v12 = vld [vmem:[%s4916_s26 + $0x68] sm:$0xff]  ;;  %v2958_v13 = vld [vmem:[%s4916_s26 + $0x78] sm:$0xff]  ;;  %v3867_v14 = vld [vmem:[%s5053_s1 + $0x10] sm:$0xff]  ;;  %v3937_v15 = vpack.c.bf16 %v2953_v10, %v2951_v9 }
 0x1dc   : > { %3904 = vmatprep.subr.bf16.mxu1 %v3903_v39  ;;  %v3939_v16 = vpack.c.bf16 %v2958_v13, %v2956_v12  ;;  %v2955_v17 = vld [vmem:[%s4916_s26 + $0x60] sm:$0xff]  ;;  %v2957_v18 = vld [vmem:[%s4916_s26 + $0x70] sm:$0xff]  ;;  %v3868_v19 = vld [vmem:[%s5053_s1 + $0x18] sm:$0xff] }
 0x1dd   : > { %3926 = vmatpush1.bf16.msra.mxu0 %v3925_v42  ;;  %v3941_v20 = vpack.c.bf16 %v2957_v18, %v2955_v17  ;;  %v2960_v21 = vld [vmem:[%s4916_s26 + $0x88] sm:$0xff]  ;;  %v2959_v22 = vld [vmem:[%s4916_s26 + $0x80] sm:$0xff]  ;;  %s3882_s26 = sshll.u32 (%p4158_p5), %s4072_s14, 1 }
 0x1de   : > { %2879 = vmatprep.subr.mxu0 %v2735_v47  ;;  %v3877_v23 = vld [vmem:[%s5053_s1 + $0x20] sm:$0xff]  ;;  %v3878_v24 = vld [vmem:[%s5053_s1 + $0x28] sm:$0xff]  ;;  %s3081_s5 = sadd.s32 (%p4158_p5), %s3883_s4, %s3882_s26 }
 0x1df   : > { %3906 = vmatpush1.bf16.msra.mxu1 %v3905_v50  ;;  %s3884_s6 = sshll.u32 (%p4158_p5), %s3081_s5, 3 }
 0x1e0   : > { %3908 = vmatprep.subr.bf16.mxu1 %v3907_v54  ;;  %s3083_s9 = scalar_lea.vmem (%p4158_p5), %s5055_s3, %s3884_s6 }
 0x1e1   : > { %2880 = vmatpush1.msra.mxu0 %v2734_v58 }
 0x1e2   : > { %3928 = vmatprep.subr.bf16.mxu0 %v3927_v59  ;;  %3875 = vmatmul.mubr.msk.f32.vlgmr.msra.gmra.mrb[0].mxu0 %vm2773_vm0, %v2701_v60 }
 0x1e3   : > { %3930 = vmatpush1.bf16.msra.mxu0 %v3929_v61  ;;  %2933 = vmatprep.mubr.f32.mxu0 %v4090_v0 }
 0x1e4   : > { %3910 = vmatpush1.bf16.msra.mxu1 %v3909_v62  ;;  %3932 = vmatprep.subr.bf16.mxu0 %v3931_v63 }
 0x1e5   : > { %2796 = vmatprep.subr.mxu1 %v2772_v5 }
 0x1e6   : > { %3876 = vmatmul.mubr.msk.f32.gmra.mrb[2].mxu0 %vm2773_vm0, %v2702_v7 }
 0x1e7   : > { %3934 = vmatpush1.bf16.msra.mxu0 %v3933_v6  ;;  %3031 = vmatprep.mubr.f32.mxu0 %v4090_v0 }
 0x1e8   : > { %2797 = vmatpush1.msra.mxu1 %v2771_v11  ;;  %3936 = vmatprep.subr.bf16.mxu0 %v3935_v8 }
 0x1e9   : > { %3873 = vmatmul.mubr.msk.f32.vlgmr.msra.gmra.mrb[0].mxu1 %vm2773_vm0, %v3867_v14  ;;  %3943 = vmatprep.subr.bf16.mxu1 %v3927_v59 }
 0x1ea   : > { %3948 = vmatpush1.bf16.msra.mxu1 %v3929_v61  ;;  %2850 = vmatprep.mubr.f32.mxu1 %v4090_v0 }
 0x1eb   : > { %3944 = vmatprep.subr.bf16.mxu1 %v3931_v63  ;;  %3938 = vmatpush1.bf16.msra.mxu0 %v3937_v15 }
 0x1ec   : > { %3940 = vmatprep.subr.bf16.mxu0 %v3939_v16 }
 0x1ed   : > { %3874 = vmatmul.mubr.msk.f32.gmra.mrb[2].mxu1 %vm2773_vm0, %v3868_v19 }
 0x1ee   : > { %3949 = vmatpush1.bf16.msra.mxu1 %v3933_v6  ;;  %3037 = vmatprep.mubr.f32.mxu1 %v4090_v0 }
 0x1ef   : > { %3945 = vmatprep.subr.bf16.mxu1 %v3935_v8  ;;  %3942 = vmatpush1.bf16.msra.mxu0 %v3941_v20 }
 0x1f0   : > { %2983 = vmatprep.subr.mxu0 %v2960_v21 }
 0x1f2   : > { %3950 = vmatpush1.bf16.msra.mxu1 %v3937_v15 }
 0x1f3   : > { %3946 = vmatprep.subr.bf16.mxu1 %v3939_v16  ;;  %2984 = vmatpush1.msra.mxu0 %v2959_v22 }
 0x1f4   : > { %3879 = vmatmul.mubr.msk.f32.vlgmr.msra.gmra.mrb[0].mxu0 %vm2773_vm0, %v3877_v23 }
 0x1f6   : > { %3951 = vmatpush1.bf16.msra.mxu1 %v3941_v20 }
 0x1f7   : > { %3947 = vmatprep.subr.mxu1 %v2960_v21 }
 0x1fa   : > { %3952 = vmatpush1.msra.mxu1 %v2959_v22 }
 0x1fb   : > { %3880 = vmatmul.mubr.msk.f32.vlgmr.msra.gmra.mrb[4].mxu1 %vm2773_vm0, %v3878_v24 }
 0x244   : > { %v3053_v35 = vpop.permute.xlu0 %3052 }
 0x248   : > { %v3058_v44 = vpop.permute.xlu0 %3057 }
 0x2b9   : > { %v2935_v0 = vpop.f32.mrb[2].mxu0 }
 0x2ba   : > { %v2937_v25 = vpop.f32.mrb[3].mxu0 }
 0x2bc   : > { %v2846_v26 = vpop.f32.mrb[0].mxu1 }
 0x2bd   : > { %v2848_v27 = vpop.f32.mrb[1].mxu1 }
 0x2c0   : > { %v2852_v28 = vpop.f32.mrb[2].mxu1 }
 0x2c1   : > { %v2936_v29 = vadd.f32 %v2935_v0, %v2852_v28  ;;  %v2854_v30 = vpop.f32.mrb[3].mxu1 }
 0x2c2   : > { %v2938_v31 = vadd.f32 %v2937_v25, %v2854_v30 }
 0x2c7   : > { %v3033_v32 = vpop.f32.mrb[0].mxu0 }
 0x2c8   : > { %v3953_v33 = vadd.f32 %v3033_v32, %v2846_v26  ;;  %v3035_v34 = vpop.f32.mrb[1].mxu0 }
 0x2c9   : > { %v3954_v36 = vadd.f32 %v3035_v34, %v2848_v27 }
 0x2ca   : > { %v3060_v37 = vadd.f32 %v3953_v33, %v3053_v35 }
 0x2cb   : > { %v3061_v38 = vadd.f32 %v3954_v36, %v3053_v35 }
 0x2cc   : > { %v3064_v39 = vmax.f32 %v3060_v37, 0.0 }
 0x2cd   : > { %v3065_v40 = vmax.f32 %v3061_v38, 0.0 }
 0x2ce   : > { %3068 = vst [vmem:[%s4172_s30] sm:$0xff] %v3064_v39  ;;  %v3039_v41 = vpop.f32.mrb[4].mxu1 }
 0x2cf   : > { %3069 = vst [vmem:[%s4172_s30 + $0x8] sm:$0xff] %v3065_v40  ;;  %v3046_v42 = vadd.f32 %v3039_v41, %v2936_v29  ;;  %v3041_v43 = vpop.f32.mrb[5].mxu1 }
 0x2d0   : > { %v3047_v45 = vadd.f32 %v3041_v43, %v2938_v31  ;;  %3078 = sbr.rel (!%p4158_p5) target bundleno = 735 (0x2df), region = 192 }
 0x2d1   : > { %v3062_v46 = vadd.f32 %v3058_v44, %v3046_v42 }
 0x2d2   : > { %v3063_v47 = vadd.f32 %v3058_v44, %v3047_v45 }
 0x2d3   : > { %v3066_v48 = vmax.f32 %v3062_v46, 0.0 }
 0x2d4   : > { %v3067_v49 = vmax.f32 %v3063_v47, 0.0 }
 0x2d5   : > { %3070 = vst [vmem:[%s4172_s30 + $0x10] sm:$0xff] %v3066_v48  ;;  %v3096_v50 = vld [vmem:[%s4172_s30] sm:$0xff] (%p4158_p5) }
 0x2d6   : > { %3071 = vst [vmem:[%s4172_s30 + $0x18] sm:$0xff] %v3067_v49  ;;  %v3098_v51 = vld [vmem:[%s4172_s30 + $0x8] sm:$0xff] (%p4158_p5)  ;;  %3097 = vst [vmem:[%s3083_s9] sm:$0xff] (%p4158_p5), %v3096_v50 }
 0x2d7   : > { %3099 = vst [vmem:[%s3083_s9 + $0x8] sm:$0xff] %v3098_v51 }
 0x2dc   : > { %v3100_v52 = vld [vmem:[%s4172_s30 + $0x10] sm:$0xff] }
 0x2dd   : > { %v3102_v53 = vld [vmem:[%s4172_s30 + $0x18] sm:$0xff]  ;;  %3101 = vst [vmem:[%s3083_s9 + $0x80] sm:$0xff] %v3100_v52 }
 0x2de   : > { %3103 = vst [vmem:[%s3083_s9 + $0x88] sm:$0xff] %v3102_v53 }
 0x2df PF: > { %s13_s18 = sadd.s32 1, %s4088_s18   ;;  %s5057_s12 = smov %s4068_s13 }
 0x2e0   : > { %p10_p5 = scmp.ge.s32.totalorder %s13_s18, 18   ;;  %s5058_s13 = smov %s4169_s27 }
 0x2e1   : > { %s5059_s14 = smov %s4080_s16  ;;  %s5060_s15 = smov %s4084_s17 }
 0x2e2   : > { %s5061_s16 = smov %s5064_s19  ;;  %s5062_s17 = smov %s5068_s20 }
 0x2e3   :  { %12 = sbr.rel (!%p10_p5) target bundleno = 4 (0x4), region = 314 }
 0x2ea   :  { %3119 = vsyncmov [#allocation3] }
 0x2ed   :  { %s3120_s23 = vpop.sfrf %3119 }
 0x2ee   :  { %p3887_p7 = scmp.ne.s32.totalorder %s3120_s23, 0 }
 0x2f0   :  { %3124 = shalt.err (%p3887_p7)  }
 0x2f1   :  { %3126 = vsyncmov [#allocation3 + $0x1] }
 0x2f4   :  { %s3127_s30 = vpop.sfrf %3126 }
 0x2f5   :  { %p3888_p8 = scmp.ne.s32.totalorder %s3127_s30, 0 }
 0x2f7   :  { %3131 = shalt.err (%p3888_p8)  }
 0x2f8   :  { %3133 = vsyncmov [#allocation3 + $0x2] }
 0x2fb   :  { %s3134_s27 = vpop.sfrf %3133 }
 0x2fc   :  { %p3889_p9 = scmp.ne.s32.totalorder %s3134_s27, 0 }
 0x2fe   :  { %3138 = shalt.err (%p3889_p9)  }
 0x2ff   :  { %3140 = vsyncmov [#allocation3 + $0x3] }
 0x302   :  { %s3141_s10 = vpop.sfrf %3140 }
 0x303   :  { %p3890_p10 = scmp.ne.s32.totalorder %s3141_s10, 0 }
 0x305   :  { %3145 = shalt.err (%p3890_p10)  }

</bundles_post_ra>
